<compile_context>
chip_gen: v7x
topology: tpu7x:2x2x1
jax: 0.10.0
libtpu: 0.0.40
codegen_flags: <defaults>
</compile_context>

<pallas_src>
import functools
import math

import jax
import jax.numpy as jnp
from jax import lax
from jax.experimental import pallas as pl
from jax.experimental.pallas import tpu as pltpu

NUM_CLASSES = 80                      # YOLOXHead(80) in the reference module
ACT_DTYPE = jnp.bfloat16              # activation / weight storage dtype
VMEM_LIMIT = 32 * 1024 * 1024         # explicit scoped-VMEM budget (v7x-safe)
TILE_TARGET_ROWS = 1024               # target flattened rows per grid step


# ---------------------------------------------------------------------------
# Pallas kernel 1: fused conv (dy-grouped, K-folded MXU dots) + bias + SiLU
#   x refs : (P, Mi, Cin_s)  flattened padded plane(s), one ref per source
#   w ref  : (G, Kg, Cout)   dy-grouped weights  (Kg = 3 * sum(Cin) for 3x3)
#   b ref  : (1, Cout)       f32 bias (folded BN)
#   o ref  : (Mo, Cout)
# ---------------------------------------------------------------------------
def _conv_kernel(*refs, n_src, cins, groups, mo, act):
    x_refs = refs[:n_src]
    w_ref = refs[n_src]
    b_ref = refs[n_src + 1]
    o_ref = refs[n_src + 2]
    cout = o_ref.shape[-1]

    # Accumulator initialized with the broadcast bias (no trailing bias add).
    acc = jnp.broadcast_to(b_ref[...], (mo, cout))
    # K-fold (channel concat of the dx shifts / sources in VMEM) only when all
    # pieces are lane-aligned; narrow early layers use per-tap dots instead.
    fold = all(c % 128 == 0 for c in cins)
    for g, taps in enumerate(groups):
        pieces, widths = [], []
        for s in range(n_src):
            for plane, off in taps:
                pieces.append(x_refs[s][plane, off:off + mo, :])
                widths.append(cins[s])
        if fold and len(pieces) > 1:
            lhs = jnp.concatenate(pieces, axis=-1)                 # (Mo, Kg)
            acc = acc + jnp.dot(lhs, w_ref[g],
                                preferred_element_type=jnp.float32)
        else:
            r0 = 0
            for piece, cw in zip(pieces, widths):
                acc = acc + jnp.dot(piece, w_ref[g, r0:r0 + cw, :],
                                    preferred_element_type=jnp.float32)
                r0 += cw
    if act == "silu":
        acc = acc * jax.nn.sigmoid(acc)                            # f32 epilogue
    o_ref[...] = acc.astype(o_ref.dtype)


def _conv_call(xs, w, b, cins, groups, mo, act, out_dtype):
    """xs: list of (B, nT, P, Mi, Cin_s); w: (G, Kg, Cout); b: (1, Cout)."""
    B, nT = xs[0].shape[:2]
    cout = w.shape[-1]
    in_specs = []
    for x in xs:
        blk = (None, None) + x.shape[2:]
        in_specs.append(pl.BlockSpec(blk, lambda bb, tt: (bb, tt, 0, 0, 0)))
    in_specs.append(pl.BlockSpec(w.shape, lambda bb, tt: (0, 0, 0)))
    in_specs.append(pl.BlockSpec(b.shape, lambda bb, tt: (0, 0)))
    kernel = functools.partial(_conv_kernel, n_src=len(xs), cins=tuple(cins),
                               groups=groups, mo=mo, act=act)
    return pl.pallas_call(
        kernel,
        out_shape=jax.ShapeDtypeStruct((B, nT, mo, cout), out_dtype),
        grid=(B, nT),
        in_specs=in_specs,
        out_specs=pl.BlockSpec((None, None, mo, cout),
                               lambda bb, tt: (bb, tt, 0, 0)),
        compiler_params=pltpu.CompilerParams(
            dimension_semantics=("parallel", "parallel"),
            vmem_limit_bytes=VMEM_LIMIT),
    )(*xs, w, b)


# ---------------------------------------------------------------------------
# Pallas kernel 2: fused head prediction + sigmoid + decode_outputs
#   p = feat @ w + b                        (M, 128)  lane-padded (85 used)
#   out[:, :2]  = (p[:, :2] + grid_xy) * stride
#   out[:, 2:4] = exp(p[:, 2:4]) * stride
#   out[:, 4:]  = sigmoid(p[:, 4:])
# ---------------------------------------------------------------------------
def _head_pred_kernel(f_ref, w_ref, b_ref, o_ref, *, wfm, stride):
    p = (jnp.dot(f_ref[...], w_ref[...], preferred_element_type=jnp.float32)
         + b_ref[...])
    ch = lax.broadcasted_iota(jnp.int32, p.shape, 1)
    mf = lax.broadcasted_iota(jnp.int32, p.shape, 0).astype(jnp.float32)
    wf, st = float(wfm), float(stride)
    gy = jnp.floor(mf / wf)
    gx = mf - gy * wf
    g = jnp.where(ch == 0, gx, jnp.where(ch == 1, gy, 0.0))
    xy = (p + g) * st
    wh = jnp.exp(jnp.where(jnp.logical_and(ch >= 2, ch < 4), p, 0.0)) * st
    sg = jax.nn.sigmoid(p)
    o_ref[...] = jnp.where(ch < 2, xy, jnp.where(ch < 4, wh, sg))


def head_pred_decode(f, p, wfm, stride):
    B, M, K = f.shape
    assert M < 2 ** 24                 # grid index recovered exactly in f32
    CP = p["w"].shape[-1]              # 128 (lane-dense store), sliced to 85
    kernel = functools.partial(_head_pred_kernel, wfm=wfm, stride=stride)
    out = pl.pallas_call(
        kernel,
        out_shape=jax.ShapeDtypeStruct((B, M, CP), jnp.float32),
        grid=(B,),
        in_specs=[pl.BlockSpec((None, M, K), lambda bb: (bb, 0, 0)),
                  pl.BlockSpec(p["w"].shape, lambda bb: (0, 0)),
                  pl.BlockSpec(p["b"].shape, lambda bb: (0, 0))],
        out_specs=pl.BlockSpec((None, M, CP), lambda bb: (bb, 0, 0)),
        compiler_params=pltpu.CompilerParams(
            dimension_semantics=("parallel",), vmem_limit_bytes=VMEM_LIMIT),
    )(f, p["w"], p["b"])
    return out[:, :, :5 + NUM_CLASSES]


# ---------------------------------------------------------------------------
# Wrapper-side layout prep (flatten + pad + overlapped row-tiling).
# ---------------------------------------------------------------------------
def _pick_tile_rows(h_out, w_pitch):
    tr = h_out
    while tr % 2 == 0 and (tr // 2) * w_pitch >= TILE_TARGET_ROWS:
        tr //= 2
    return tr


def _tile_rows(x5, tr, halo):
    """x5: (B, P, Hp, Wp, C) with Hp == nT*tr + halo -> (B, nT, P, (tr+halo)*Wp, C)."""
    B, P, Hp, Wp, C = x5.shape
    nT = (Hp - halo) // tr
    if nT == 1:
        return x5.reshape(B, 1, P, Hp * Wp, C)
    if halo == 0:
        return x5.reshape(B, P, nT, tr * Wp, C).transpose(0, 2, 1, 3, 4)
    # TODO(synk): overlapped re-tiling duplicates `halo` rows per tile in HBM;
    # an in-kernel halo DMA would avoid the duplication entirely.
    tiles = [x5[:, :, t * tr:t * tr + tr + halo] for t in range(nT)]
    return jnp.stack(tiles, axis=1).reshape(B, nT, P, (tr + halo) * Wp, C)


def _prep_1x1(x, tr):
    B, H, W, C = x.shape
    xt = _tile_rows(x.reshape(B, 1, H, W, C), tr, 0)
    groups = (((0, 0),),)
    return xt, groups, tr * W, (H // tr, tr, W, W)


def _prep_s1(x, tr):
    """3x3 stride-1, pad 1.  Flattened (tr+3, W+2) tiles; tap = row slice."""
    B, H, W, C = x.shape
    Wp = W + 2
    xp = jnp.pad(x, ((0, 0), (1, 2), (1, 1), (0, 0)))            # (B, H+3, Wp, C)
    xt = _tile_rows(xp.reshape(B, 1, H + 3, Wp, C), tr, 3)
    groups = tuple(tuple((0, dy * Wp + dx) for dx in range(3)) for dy in range(3))
    return xt, groups, tr * Wp, (H // tr, tr, Wp, W)


def _prep_s2(x, tr):
    """3x3 stride-2, pad 1.  2x2 phase split so taps stay stride-1 slices."""
    B, H, W, C = x.shape
    Ho, Wo = H // 2, W // 2
    Hh, Wh = Ho + 2, Wo + 1
    xp = jnp.pad(x, ((0, 0), (1, 3), (1, 1), (0, 0)))            # (B, 2Hh, 2Wh, C)
    xr = xp.reshape(B, Hh, 2, Wh, 2, C).transpose(0, 2, 4, 1, 3, 5)
    xt = _tile_rows(xr.reshape(B, 4, Hh, Wh, C), tr, 2)          # plane = py*2+px
    groups = tuple(
        tuple(((dy % 2) * 2 + (dx % 2), (dy // 2) * Wh + (dx // 2))
              for dx in range(3))
        for dy in range(3))
    return xt, groups, tr * Wh, (Ho // tr, tr, Wh, Wo)


def conv_act(xs, p, stride=1, act="silu", out_dtype=ACT_DTYPE, tile_rows=None):
    """BaseConv (conv + folded BN + SiLU).  `xs` may be a list of sources
    (in-kernel split-K replacement for conv(concat(xs, channel)))."""
    if not isinstance(xs, (list, tuple)):
        xs = [xs]
    B, H, W, _ = xs[0].shape
    for x in xs:
        assert x.shape[:3] == (B, H, W)
    k = p["k"]
    if k == 1:
        h_out, w_pitch, prep = H, W, _prep_1x1
    elif stride == 1:
        h_out, w_pitch, prep = H, W + 2, _prep_s1
    else:
        assert H % 2 == 0 and W % 2 == 0
        h_out, w_pitch, prep = H // 2, W // 2 + 1, _prep_s2
    tr = tile_rows if tile_rows is not None else _pick_tile_rows(h_out, w_pitch)
    assert h_out % tr == 0
    planes, groups, mo, geom = [], None, None, None
    for x in xs:
        xt, groups, mo, geom = prep(x, tr)
        planes.append(xt)
    cins = [x.shape[-1] for x in xs]
    y = _conv_call(planes, p["w"], p["b"], cins, groups, mo, act, out_dtype)
    nT, trr, wpc, wv = geom
    cout = p["w"].shape[-1]
    y = y.reshape(B, nT * trr, wpc, cout)
    if wpc != wv:
        y = y[:, :, :wv, :]          # drop per-row garbage columns from padding
    return y


# ---------------------------------------------------------------------------
# Deterministic synthetic parameters (eval-mode BN folded into the conv bias)
# ---------------------------------------------------------------------------
def _pack_conv_params(w_list, b):
    """w_list: f32 HWIO (k,k,Cin_s,Cout) weights, one per source -> dy-grouped."""
    k = w_list[0].shape[0]
    cout = w_list[0].shape[-1]
    if k == 1:
        w = jnp.concatenate([ws[0, 0] for ws in w_list], axis=0)[None]
    else:
        gs = []
        for dy in range(3):
            rows = [ws[dy, dx] for ws in w_list for dx in range(3)]
            gs.append(jnp.concatenate(rows, axis=0))
        w = jnp.stack(gs, axis=0)                      # (3, 3*sum(Cin), Cout)
    return {"w": w.astype(ACT_DTYPE),
            "b": b.reshape(1, cout).astype(jnp.float32), "k": k}


def _conv_param(key, k, cins, cout):
    if isinstance(cins, int):
        cins = [cins]
    fan_in = k * k * sum(cins)
    keys = jax.random.split(key, len(cins) + 1)
    w_list = [jax.random.normal(kk, (k, k, ci, cout), jnp.float32)
              / math.sqrt(fan_in) for kk, ci in zip(keys[:-1], cins)]
    b = 0.01 * jax.random.normal(keys[-1], (cout,), jnp.float32)
    return _pack_conv_params(w_list, b)


def _blockdiag_branch_param(key, hid):
    """Second cls/reg branch conv pair as ONE kernel: block-diagonal weight so
    the packed [cls_feat | reg_feat] channels stay independent."""
    k1, k2, k3 = jax.random.split(key, 3)
    scale = 1.0 / math.sqrt(9 * hid)
    w = jnp.zeros((3, 3, 2 * hid, 2 * hid), jnp.float32)
    w = w.at[:, :, :hid, :hid].set(scale * jax.random.normal(k1, (3, 3, hid, hid)))
    w = w.at[:, :, hid:, hid:].set(scale * jax.random.normal(k2, (3, 3, hid, hid)))
    b = 0.01 * jax.random.normal(k3, (2 * hid,), jnp.float32)
    return _pack_conv_params([w], b)


def _head_pred_param(key, hid):
    C, CP = 5 + NUM_CLASSES, 128       # lane-padded to 128 for unmasked stores
    k1, k2, k3 = jax.random.split(key, 3)
    # feature layout is [cls_feat | reg_feat]; cls -> lanes 5..84, reg+obj -> 0..4
    w = jnp.zeros((2 * hid, CP), jnp.float32)
    w = w.at[:hid, 5:C].set(
        jax.random.normal(k1, (hid, NUM_CLASSES), jnp.float32) / math.sqrt(hid))
    w = w.at[hid:, 0:5].set(
        jax.random.normal(k2, (hid, 5), jnp.float32) / math.sqrt(hid))
    b = jnp.zeros((1, CP), jnp.float32).at[:, :C].set(
        0.01 * jax.random.normal(k3, (1, C), jnp.float32))
    return {"w": w.astype(ACT_DTYPE), "b": b}


def init_params(key):
    keys = iter(jax.random.split(key, 40))
    P = {}
    P["stem"] = _conv_param(next(keys), 3, 12, 32)     # Focus conv (4*3 -> 32)
    widths = [(32, 64), (64, 128), (128, 256), (256, 512)]
    P["backbone"] = [_conv_param(next(keys), 3, ci, co) for ci, co in widths]
    # Simplified PAFPN; fusion convs take two sources (split-K) instead of a
    # channel concat materialized in HBM.
    P["lat5"] = _conv_param(next(keys), 1, 512, 128)
    P["p4"] = _conv_param(next(keys), 3, [128, 256], 128)
    P["p3"] = _conv_param(next(keys), 3, [128, 128], 128)
    P["d3"] = _conv_param(next(keys), 3, 128, 128)
    P["n4"] = _conv_param(next(keys), 3, [128, 128], 128)
    P["d4"] = _conv_param(next(keys), 3, 128, 128)
    P["n5"] = _conv_param(next(keys), 3, [128, 128], 128)
    hid = 128
    P["head"] = []
    for _ in range(3):
        P["head"].append({
            "stem": _conv_param(next(keys), 1, 128, hid),
            "branch1": _conv_param(next(keys), 3, hid, 2 * hid),   # [cls1|reg1]
            "branch2": _blockdiag_branch_param(next(keys), hid),   # [cls2|reg2]
            "pred": _head_pred_param(next(keys), hid),
        })
    return P


# ---------------------------------------------------------------------------
# Forward pass (inference path of YOLOX.forward, decode_in_inference == True)
# ---------------------------------------------------------------------------
def yolox_forward(params, x_nchw):
    x = jnp.transpose(x_nchw, (0, 2, 3, 1)).astype(ACT_DTYPE)   # NCHW -> NHWC
    B, H, W, C = x.shape

    # Focus stem: 2x2 space-to-depth (stride 2) then 3x3 conv (Cin 12 -> 32).
    xf = x.reshape(B, H // 2, 2, W // 2, 2, C).transpose(0, 1, 3, 2, 4, 5)
    xf = xf.reshape(B, H // 2, W // 2, 4 * C)
    h = conv_act(xf, params["stem"])

    feats = []
    for i, p in enumerate(params["backbone"]):
        h = conv_act(h, p, stride=2)
        if i >= 1:
            feats.append(h)
    c3, c4, c5 = feats            # strides 8 / 16 / 32, channels 128/256/512

    # ---- simplified PAFPN ----
    p5 = conv_act(c5, params["lat5"])
    up5 = jnp.repeat(jnp.repeat(p5, 2, axis=1), 2, axis=2)
    p4 = conv_act([up5, c4], params["p4"])
    up4 = jnp.repeat(jnp.repeat(p4, 2, axis=1), 2, axis=2)
    p3 = conv_act([up4, c3], params["p3"])
    d3 = conv_act(p3, params["d3"], stride=2)
    n4 = conv_act([d3, p4], params["n4"])
    d4 = conv_act(n4, params["d4"], stride=2)
    n5 = conv_act([d4, p5], params["n5"])
    fpn_outs = (p3, n4, n5)
    strides = (8, 16, 32)

    # ---- decoupled YOLOX head: merged cls/reg branches + fused pred/decode ----
    level_outs = []
    for lvl, f, st in zip(params["head"], fpn_outs, strides):
        s = conv_act(f, lvl["stem"])                 # 1x1 stem
        bf = conv_act(s, lvl["branch1"])             # one call for [cls1 | reg1]
        bf = conv_act(bf, lvl["branch2"])            # block-diag [cls2 | reg2]
        Bh, Hh, Wh, C2 = bf.shape
        level_outs.append(
            head_pred_decode(bf.reshape(Bh, Hh * Wh, C2), lvl["pred"], Wh, st))
    return jnp.concatenate(level_outs, axis=1)       # (B, n_anchors, 85)


# ---------------------------------------------------------------------------
# Reference conv (lax) used for in-script correctness checks of the kernels.
# ---------------------------------------------------------------------------
def _ref_conv(xs, w_list, b, k, stride, act):
    pad = ((1, 1), (1, 1)) if k == 3 else ((0, 0), (0, 0))
    acc = None
    for x, w in zip(xs, w_list):
        y = lax.conv_general_dilated(
            x.astype(jnp.float32), w.astype(jnp.float32),
            window_strides=(stride, stride), padding=pad,
            dimension_numbers=("NHWC", "HWIO", "NHWC"),
            precision=lax.Precision.HIGHEST)
        acc = y if acc is None else acc + y
    acc = acc + b.reshape(1, 1, 1, -1)
    if act == "silu":
        acc = acc * jax.nn.sigmoid(acc)
    return acc


def _check_conv(key, cins, cout, k, stride, hw, tile_rows=None):
    kw, kb, kx = jax.random.split(key, 3)
    wkeys = jax.random.split(kw, len(cins))
    xkeys = jax.random.split(kx, len(cins))
    fan_in = k * k * sum(cins)
    w_list = [jax.random.normal(kk, (k, k, ci, cout), jnp.float32)
              / math.sqrt(fan_in) for kk, ci in zip(wkeys, cins)]
    b = 0.01 * jax.random.normal(kb, (cout,), jnp.float32)
    xs = [jax.random.normal(kk, (2, hw, hw, ci), jnp.float32).astype(ACT_DTYPE)
          for kk, ci in zip(xkeys, cins)]
    p = _pack_conv_params(w_list, b)
    got = conv_act(list(xs), p, stride=stride, act="silu",
                   out_dtype=jnp.float32, tile_rows=tile_rows)
    want = _ref_conv(xs, [w.astype(ACT_DTYPE) for w in w_list], b, k, stride,
                     "silu")
    err = float(jnp.max(jnp.abs(got - want)))
    assert err < 3e-2, (cins, cout, k, stride, hw, tile_rows, err)


if __name__ == "__main__":
    key = jax.random.PRNGKey(0)
    kx, kp, kc = jax.random.split(key, 3)

    # Kernel-vs-lax.conv checks: K-folded path, two-source split-K, stride-2,
    # the narrow per-tap fallback, 1x1, and the row-tiled (nT > 1) grid path.
    cks = jax.random.split(kc, 6)
    _check_conv(cks[0], [128], 128, 3, 1, 8)                   # lane-aligned K-fold
    _check_conv(cks[1], [128, 256], 128, 3, 1, 8)              # two-source fusion
    _check_conv(cks[2], [128], 128, 3, 2, 16, tile_rows=2)     # stride-2 + tiling
    _check_conv(cks[3], [12], 32, 3, 1, 16, tile_rows=4)       # narrow fallback
    _check_conv(cks[4], [32], 64, 3, 2, 8)                     # narrow stride-2
    _check_conv(cks[5], [512], 128, 1, 1, 8, tile_rows=2)      # 1x1 + tiling

    # Full forward.  Small input consistent with YOLOX (stride-32 divisible).
    x = jax.random.normal(kx, (2, 3, 64, 64), jnp.float32)     # NCHW like PyTorch
    params = init_params(kp)
    out = yolox_forward(params, x)
    out = jax.block_until_ready(out)

    n_anchors = (64 // 8) ** 2 + (64 // 16) ** 2 + (64 // 32) ** 2
    assert out.shape == (2, n_anchors, 5 + NUM_CLASSES), out.shape
    assert bool(jnp.all(jnp.isfinite(out)))
    print("KERNEL_OK")
</pallas_src>

<mosaic_0001>
module attributes {stable_mosaic.version = 11 : i64} {
  func.func @_conv_kernel(%arg0: i32, %arg1: i32, %arg2: memref<1x1x1x110x128xbf16, #tpu.memory_space<vmem>>, %arg3: memref<3x384x128xbf16, #tpu.memory_space<vmem>>, %arg4: memref<1x128xf32, #tpu.memory_space<vmem>>, %arg5: memref<1x1x80x128xf32, #tpu.memory_space<vmem>>) attributes {dimension_semantics = [#tpu.dimension_semantics<parallel>, #tpu.dimension_semantics<parallel>], iteration_bounds = array<i64: 2, 1>, scalar_prefetch = 0 : i64, scratch_operands = 0 : i64, tpu.core_type = #tpu.core_type<tc>, window_params = [{transform_indices = @transform_0, window_bounds = array<i64: 1, 1, 1, 110, 128>}, {pipeline_mode = #tpu.pipeline_mode<synchronous>, transform_indices = @transform_1, window_bounds = array<i64: 3, 384, 128>}, {pipeline_mode = #tpu.pipeline_mode<synchronous>, transform_indices = @transform_2, window_bounds = array<i64: 1, 128>}, {transform_indices = @transform_3, window_bounds = array<i64: 1, 1, 80, 128>}]} {
    %c0 = arith.constant 0 : index
    %c0_0 = arith.constant 0 : index
    %0 = vector.load %arg4[%c0, %c0_0] : memref<1x128xf32, #tpu.memory_space<vmem>>, vector<1x128xf32>
    %1 = vector.shape_cast %0 : vector<1x128xf32> to vector<1x128xf32>
    %2 = vector.broadcast %1 : vector<1x128xf32> to vector<80x128xf32>
    %c0_1 = arith.constant 0 : index
    %c0_2 = arith.constant 0 : index
    %c0_3 = arith.constant 0 : index
    %c0_4 = arith.constant 0 : index
    %c0_5 = arith.constant 0 : index
    %3 = vector.load %arg2[%c0_1, %c0_2, %c0_3, %c0_4, %c0_5] : memref<1x1x1x110x128xbf16, #tpu.memory_space<vmem>>, vector<1x1x1x80x128xbf16>
    %4 = vector.shape_cast %3 : vector<1x1x1x80x128xbf16> to vector<80x128xbf16>
    %c0_6 = arith.constant 0 : index
    %c0_7 = arith.constant 0 : index
    %c0_8 = arith.constant 0 : index
    %c1 = arith.constant 1 : index
    %c0_9 = arith.constant 0 : index
    %5 = vector.load %arg2[%c0_6, %c0_7, %c0_8, %c1, %c0_9] : memref<1x1x1x110x128xbf16, #tpu.memory_space<vmem>>, vector<1x1x1x80x128xbf16>
    %6 = vector.shape_cast %5 : vector<1x1x1x80x128xbf16> to vector<80x128xbf16>
    %c0_10 = arith.constant 0 : index
    %c0_11 = arith.constant 0 : index
    %c0_12 = arith.constant 0 : index
    %c2 = arith.constant 2 : index
    %c0_13 = arith.constant 0 : index
    %7 = vector.load %arg2[%c0_10, %c0_11, %c0_12, %c2, %c0_13] : memref<1x1x1x110x128xbf16, #tpu.memory_space<vmem>>, vector<1x1x1x80x128xbf16>
    %8 = vector.shape_cast %7 : vector<1x1x1x80x128xbf16> to vector<80x128xbf16>
    %9 = tpu.concatenate %4, %6, %8 in 1 : vector<80x128xbf16>, vector<80x128xbf16>, vector<80x128xbf16> -> vector<80x384xbf16>
    %c0_14 = arith.constant 0 : index
    %c0_15 = arith.constant 0 : index
    %c0_16 = arith.constant 0 : index
    %10 = vector.load %arg3[%c0_14, %c0_15, %c0_16] : memref<3x384x128xbf16, #tpu.memory_space<vmem>>, vector<1x384x128xbf16>
    %11 = vector.shape_cast %10 : vector<1x384x128xbf16> to vector<384x128xbf16>
    %cst = arith.constant dense<0.000000e+00> : vector<80x128xf32>
    %12 = tpu.matmul %9, %11, %cst {dimension_numbers = #tpu.dot_dimension_numbers<[1], [0], [0], [1], [0, 0, 1, 1], [], []>} : vector<80x384xbf16>, vector<384x128xbf16>, vector<80x128xf32> -> vector<80x128xf32>
    %13 = arith.addf %2, %12 : vector<80x128xf32>
    %c0_17 = arith.constant 0 : index
    %c0_18 = arith.constant 0 : index
    %c0_19 = arith.constant 0 : index
    %c10 = arith.constant 10 : index
    %c0_20 = arith.constant 0 : index
    %14 = vector.load %arg2[%c0_17, %c0_18, %c0_19, %c10, %c0_20] : memref<1x1x1x110x128xbf16, #tpu.memory_space<vmem>>, vector<1x1x1x80x128xbf16>
    %15 = vector.shape_cast %14 : vector<1x1x1x80x128xbf16> to vector<80x128xbf16>
    %c0_21 = arith.constant 0 : index
    %c0_22 = arith.constant 0 : index
    %c0_23 = arith.constant 0 : index
    %c11 = arith.constant 11 : index
    %c0_24 = arith.constant 0 : index
    %16 = vector.load %arg2[%c0_21, %c0_22, %c0_23, %c11, %c0_24] : memref<1x1x1x110x128xbf16, #tpu.memory_space<vmem>>, vector<1x1x1x80x128xbf16>
    %17 = vector.shape_cast %16 : vector<1x1x1x80x128xbf16> to vector<80x128xbf16>
    %c0_25 = arith.constant 0 : index
    %c0_26 = arith.constant 0 : index
    %c0_27 = arith.constant 0 : index
    %c12 = arith.constant 12 : index
    %c0_28 = arith.constant 0 : index
    %18 = vector.load %arg2[%c0_25, %c0_26, %c0_27, %c12, %c0_28] : memref<1x1x1x110x128xbf16, #tpu.memory_space<vmem>>, vector<1x1x1x80x128xbf16>
    %19 = vector.shape_cast %18 : vector<1x1x1x80x128xbf16> to vector<80x128xbf16>
    %20 = tpu.concatenate %15, %17, %19 in 1 : vector<80x128xbf16>, vector<80x128xbf16>, vector<80x128xbf16> -> vector<80x384xbf16>
    %c1_29 = arith.constant 1 : index
    %c0_30 = arith.constant 0 : index
    %c0_31 = arith.constant 0 : index
    %21 = vector.load %arg3[%c1_29, %c0_30, %c0_31] : memref<3x384x128xbf16, #tpu.memory_space<vmem>>, vector<1x384x128xbf16>
    %22 = vector.shape_cast %21 : vector<1x384x128xbf16> to vector<384x128xbf16>
    %cst_32 = arith.constant dense<0.000000e+00> : vector<80x128xf32>
    %23 = tpu.matmul %20, %22, %cst_32 {dimension_numbers = #tpu.dot_dimension_numbers<[1], [0], [0], [1], [0, 0, 1, 1], [], []>} : vector<80x384xbf16>, vector<384x128xbf16>, vector<80x128xf32> -> vector<80x128xf32>
    %24 = arith.addf %13, %23 : vector<80x128xf32>
    %c0_33 = arith.constant 0 : index
    %c0_34 = arith.constant 0 : index
    %c0_35 = arith.constant 0 : index
    %c20 = arith.constant 20 : index
    %c0_36 = arith.constant 0 : index
    %25 = vector.load %arg2[%c0_33, %c0_34, %c0_35, %c20, %c0_36] : memref<1x1x1x110x128xbf16, #tpu.memory_space<vmem>>, vector<1x1x1x80x128xbf16>
    %26 = vector.shape_cast %25 : vector<1x1x1x80x128xbf16> to vector<80x128xbf16>
    %c0_37 = arith.constant 0 : index
    %c0_38 = arith.constant 0 : index
    %c0_39 = arith.constant 0 : index
    %c21 = arith.constant 21 : index
    %c0_40 = arith.constant 0 : index
    %27 = vector.load %arg2[%c0_37, %c0_38, %c0_39, %c21, %c0_40] : memref<1x1x1x110x128xbf16, #tpu.memory_space<vmem>>, vector<1x1x1x80x128xbf16>
    %28 = vector.shape_cast %27 : vector<1x1x1x80x128xbf16> to vector<80x128xbf16>
    %c0_41 = arith.constant 0 : index
    %c0_42 = arith.constant 0 : index
    %c0_43 = arith.constant 0 : index
    %c22 = arith.constant 22 : index
    %c0_44 = arith.constant 0 : index
    %29 = vector.load %arg2[%c0_41, %c0_42, %c0_43, %c22, %c0_44] : memref<1x1x1x110x128xbf16, #tpu.memory_space<vmem>>, vector<1x1x1x80x128xbf16>
    %30 = vector.shape_cast %29 : vector<1x1x1x80x128xbf16> to vector<80x128xbf16>
    %31 = tpu.concatenate %26, %28, %30 in 1 : vector<80x128xbf16>, vector<80x128xbf16>, vector<80x128xbf16> -> vector<80x384xbf16>
    %c2_45 = arith.constant 2 : index
    %c0_46 = arith.constant 0 : index
    %c0_47 = arith.constant 0 : index
    %32 = vector.load %arg3[%c2_45, %c0_46, %c0_47] : memref<3x384x128xbf16, #tpu.memory_space<vmem>>, vector<1x384x128xbf16>
    %33 = vector.shape_cast %32 : vector<1x384x128xbf16> to vector<384x128xbf16>
    %cst_48 = arith.constant dense<0.000000e+00> : vector<80x128xf32>
    %34 = tpu.matmul %31, %33, %cst_48 {dimension_numbers = #tpu.dot_dimension_numbers<[1], [0], [0], [1], [0, 0, 1, 1], [], []>} : vector<80x384xbf16>, vector<384x128xbf16>, vector<80x128xf32> -> vector<80x128xf32>
    %35 = arith.addf %24, %34 : vector<80x128xf32>
    %36 = arith.negf %35 : vector<80x128xf32>
    %37 = math.exp %36 : vector<80x128xf32>
    %cst_49 = arith.constant 1.000000e+00 : f32
    %38 = vector.broadcast %cst_49 : f32 to vector<80x128xf32>
    %39 = arith.addf %38, %37 : vector<80x128xf32>
    %40 = arith.divf %38, %39 : vector<80x128xf32>
    %41 = arith.mulf %35, %40 : vector<80x128xf32>
    %c0_50 = arith.constant 0 : index
    %c0_51 = arith.constant 0 : index
    %c0_52 = arith.constant 0 : index
    %c0_53 = arith.constant 0 : index
    %42 = vector.load %arg5[%c0_50, %c0_51, %c0_52, %c0_53] : memref<1x1x80x128xf32, #tpu.memory_space<vmem>>, vector<1x1x80x128xf32>
    %43 = vector.shape_cast %42 : vector<1x1x80x128xf32> to vector<80x128xf32>
    %44 = vector.shape_cast %41 : vector<80x128xf32> to vector<1x1x80x128xf32>
    tpu.vector_store %arg5[%c0_50, %c0_51, %c0_52, %c0_53], %44 {strides = array<i32>} : memref<1x1x80x128xf32, #tpu.memory_space<vmem>>, vector<1x1x80x128xf32>,
    return
  }
  func.func @transform_0(%arg0: i32, %arg1: i32) -> (i32, i32, i32, i32, i32) {
    %c0_i32 = arith.constant 0 : i32
    %c0_i32_0 = arith.constant 0 : i32
    %c0_i32_1 = arith.constant 0 : i32
    %c0_i32_2 = arith.constant 0 : i32
    return %arg0, %arg1, %c0_i32, %c0_i32_0, %c0_i32_1 : i32, i32, i32, i32, i32
  }
  func.func @transform_1(%arg0: i32, %arg1: i32) -> (i32, i32, i32) {
    %c0_i32 = arith.constant 0 : i32
    %c0_i32_0 = arith.constant 0 : i32
    %c0_i32_1 = arith.constant 0 : i32
    %c0_i32_2 = arith.constant 0 : i32
    return %c0_i32, %c0_i32_0, %c0_i32_1 : i32, i32, i32
  }
  func.func @transform_2(%arg0: i32, %arg1: i32) -> (i32, i32) {
    %c0_i32 = arith.constant 0 : i32
    %c0_i32_0 = arith.constant 0 : i32
    %c0_i32_1 = arith.constant 0 : i32
    return %c0_i32, %c0_i32_0 : i32, i32
  }
  func.func @transform_3(%arg0: i32, %arg1: i32) -> (i32, i32, i32, i32) {
    %c0_i32 = arith.constant 0 : i32
    %c0_i32_0 = arith.constant 0 : i32
    %c0_i32_1 = arith.constant 0 : i32
    return %arg0, %arg1, %c0_i32, %c0_i32_0 : i32, i32, i32, i32
  }
}

</mosaic_0001>

<bundles_post_ra>
// kernel: tpu_custom_call.1
= control target key start
LH: loop header
LB: loop body
LE: loop exit
PB: predicated region body
PF: predicated region fallthrough
CT: control target
= control target key end

     0   :  { %8 = vsyncpa [#allocation3], 0  ;;  %s3164_s0 = inlined_call_operand.vmem [shape: bf16[2,1,1,110,128], index: 0, kind: input, shape index: {}]   ;;  %s3165_s1 = inlined_call_operand.hbm [shape: bf16[3,384,128], index: 1, kind: input, shape index: {}]   ;;  %s3166_s2 = inlined_call_operand.vmem [shape: f32[1,128], index: 2, kind: input, shape index: {}]   ;;  %s3167_s3 = inlined_call_operand.hbm [shape: f32[2,1,80,128], index: 3, kind: output, shape index: {}]  }
   0x1   :  { %9 = vsyncpa [#allocation4], 0 }
   0x2   :  { %11 = vsyncpa [#allocation4 + $0x1], 0  ;;  %s2703_s12 = smov 0   ;;  %s2705_s13 = smov 0  }
   0x3   :  { %s2707_s14 = smov 0   ;;  %s2709_s15 = smov 0  }
   0x4   :  { %s2711_s16 = smov 0   ;;  %s2713_s17 = smov 0  }
   0x5 LB: > { %s1871_s18 = sadd.s32 4294967295, %s2673_s17   ;;  %s1872_s19 = sadd.s32 4294967294, %s2673_s17   ;;  %s2673_s17 = sphi %s2713_s17, %s17_s17   ;;  %s2669_s16 = sphi %s2711_s16, %s3185_s16   ;;  %s2665_s15 = sphi %s2709_s15, %s3184_s15   ;;  %s2661_s14 = sphi %s2707_s14, %s3183_s14   ;;  %s2657_s13 = sphi %s2705_s13, %s3182_s13   ;;  %s2653_s12 = sphi %s2703_s12, %s3181_s12  }
   0x6   : > { %s29_s20 = sadd.s32 1, %s2669_s16  ;;  %s108_s21 = sadd.s32 1, %s2661_s14 }
   0x7   : > { %p31_p0 = scmp.ge.s32.totalorder %s29_s20, 2  ;;  %p118_p1 = scmp.ne.s32.totalorder %s2661_s14, %s2657_s13 }
   0x8   : > { %p119_p2 = scmp.eq.s32.totalorder %s1871_s18, 1  ;;  %p124_p3 = scmp.ne.s32.totalorder %s2657_s13, %s2653_s12 }
   0x9   : > { %s3187_s20 = smov (%p31_p0, %s29_s20), 0  ;;  %p125_p5 = scmp.eq.s32.totalorder %s1872_s19, 1 }
   0xa   : > { %p2743_p4 = por %p119_p2, %p118_p1  ;;  %s103_s23 = ssub.s32 %s2669_s16, %s3187_s20 }
   0xb   : > { %p1873_p6 = scmp.ge.s32.totalorder %s2673_s17, 1  ;;  %p106_p7 = scmp.eq.s32.totalorder %s103_s23, 0 }
   0xc   : > { %s3172_s22 = scalar_select %p2743_p4, 1, 0 }
   0xd   : > { %p2750_p8 = por %p125_p5, %p124_p3  ;;  %p132_p9 = scmp.lt.s32.totalorder %s2673_s17, 3 }
   0xe   : > { %s2756_s25 = scalar_select %p106_p7, %s2661_s14, %s108_s21  }
   0xf   : > { %s3173_s24 = scalar_select %p2750_p8, 1, 0 }
  0x10   : > { %p2758_p10 = pnand %p1873_p6, %p132_p9  ;;  %p2762_p11 = scmp.eq.s32.totalorder %s1871_s18, 0 }
  0x11   : > { %s2675_s28 = smov [#allocation2]   ;;  %s2563_s6 = scalar_lea.hbm %s3165_s1, 9216 }
  0x12   : > { %s3174_s26 = scalar_select %p2758_p10, 1, 0 }
  0x13   : > { %s3175_s27 = scalar_select %p2762_p11, 1, 0 }
  0x14   : > { %p2362_p12 = pneg %p2758_p10  ;;  %s144_s29 = sshll.u32 %s2675_s28, 4  ;;  %s145_s29 = int_to_ptr.vmem [resolvable:$true] %s144_s29 }
  0x15   : > { %p2564_p0 = scmp.ne.s32.totalorder %s3165_s1, %s2563_s6  ;;  %p2570_p5 = scmp.lt.u32.totalorder %s2563_s6, %s3165_s1 }
  0x16   : > { %p2770_p13 = pnand %p2762_p11, %p2362_p12 }
  0x18   : > { %p2565_p1 = pneg %p2770_p13 }
  0x1a   : > { %p2566_p2 = pnand %p2565_p1, %p2564_p0 }
  0x1c   : > { %p2567_p3 = pneg %p2566_p2 }
  0x1e   : > { %p2572_p6 = pnand %p2570_p5, %p2567_p3 }
  0x20   : > { %2575 = shalt.err (!%p2572_p6)
}
  0x21   : > { %s2576_s11 = scalar_lea.vmem %s145_s29, 9216  ;;  %p2584_p8 = scmp.lt.s32.totalorder %s145_s29, %s145_s29 }
  0x22   : > { %p2577_p7 = scmp.ne.s32.totalorder %s145_s29, %s2576_s11  ;;  %p2585_p4 = scmp.lt.s32.totalorder %s2576_s11, %s2576_s11 }
  0x24   : > { %p2579_p9 = pnand %p2577_p7, %p2565_p1  ;;  %p2586_p11 = por %p2585_p4, %p2584_p8 }
  0x26   : > { %p2580_p12 = pneg %p2579_p9 }
  0x28   : > { %p2587_p10 = pnand %p2586_p11, %p2580_p12 }
  0x2a   : > { %2590 = shalt.err (!%p2587_p10)
}
  0x2b   : > { %s2676_s18 = smov 64   ;;  %s2677_s19 = smov 4  }
  0x2c   : > { %2365 = dma.hbm_to_vmem [thread:$0]  (!%p2770_p13), %s3165_s1, 9216, %s145_s29, [#allocation3], %s2676_s18, %s2676_s18, %s2677_s19  }
  0x2d   : > { %p3177_p0 = scmp.ne.s32.totalorder %s3174_s26, 0 }
  0x2e   : > { %p3178_p2 = scmp.ne.s32.totalorder (!%p3177_p0), %s3175_s27, 0 }
  0x2f   : > { %175 = sbr.rel (%p3177_p0) target bundleno = 466 (0x1d2), region = 32 }
  0x36   : > { %2644 = dma.done.wait (%p3178_p2), [#allocation3], 9216  }
  0x37   : > { %2646 = vsyncadd (%p3178_p2), [#allocation3], 4294958080  ;;  %v2678_v0 = vmov 0.0   ;;  %vm2679_vm0 = vmmov 0   ;;  %v2428_v1 = vld [vmem:[#allocation2 + $0x40] sm:$0xff]   ;;  %v2431_v4 = vld [vmem:[#allocation2 + $0x48] sm:$0xff]  }
  0x38   : > { %2165 = vmatprep.subr.bf16.mxu1 %v2678_v0  ;;  %2181 = vmatprep.mubr.msk.bf16.mxu1 %vm2679_vm0, %v2678_v0  ;;  %v2429_v2 = vld [vmem:[#allocation2 + $0x80] sm:$0xff]   ;;  %v2432_v5 = vld [vmem:[#allocation2 + $0x88] sm:$0xff]   ;;  %v2434_v7 = vld [vmem:[#allocation2 + $0x50] sm:$0xff]   ;;  %p203_p4 = scmp.lt.s32.totalorder %s2665_s15, 1  ;;  %vm265_vm1 = vsmask.f32 7424 }
  0x39   : > { %1988 = vmatprep.subr.bf16.mxu0 %v2428_v1  ;;  %v2430_v3 = vld [vmem:[#allocation2] sm:$0xff]   ;;  %2166 = vmatpush3.bf16.msra.mxu1 %v2429_v2  ;;  %v2433_v6 = vld [vmem:[#allocation2 + $0x8] sm:$0xff]   ;;  %v2435_v8 = vld [vmem:[#allocation2 + $0x90] sm:$0xff]   ;;  %vm318_vm2 = vcmask 1046528   ;;  %vm1332_vm3 = vcmask 1045504   ;;  %s200_s6 = sand.u32 1, %s2657_s13  }
  0x3a   : > { %1989 = vmatpush3.bf16.msra.mxu0 %v2430_v3  ;;  %2167 = vmatprep.subr.bf16.mxu1 %v2678_v0  ;;  %v2436_v9 = vld [vmem:[#allocation2 + $0x10] sm:$0xff]   ;;  %v2437_v10 = vld [vmem:[#allocation2 + $0x58] sm:$0xff]   ;;  %v2440_v13 = vld [vmem:[#allocation2 + $0x60] sm:$0xff]   ;;  %s204_s26 = scalar_select %p203_p4, %s2665_s15, 1 }
  0x3b   : > { %1990 = vmatprep.subr.bf16.mxu0 %v2431_v4  ;;  %v2438_v11 = vld [vmem:[#allocation2 + $0x98] sm:$0xff]   ;;  %v2441_v14 = vld [vmem:[#allocation2 + $0xa0] sm:$0xff]   ;;  %v2443_v16 = vld [vmem:[#allocation2 + $0x68] sm:$0xff]   ;;  %s2353_s7 = smul.u32 80, %s200_s6  ;;  %s3118_s21 = scalar_lea.sflag [#allocation4], %s200_s6 }
  0x3c   : > { %v2439_v12 = vld [vmem:[#allocation2 + $0x18] sm:$0xff]   ;;  %v2442_v15 = vld [vmem:[#allocation2 + $0x20] sm:$0xff]   ;;  %s2354_s27 = smul.u32 56, %s204_s26  ;;  %v2444_v17 = vld [vmem:[#allocation2 + $0xa8] sm:$0xff]   ;;  %p3179_p10 = scmp.ne.s32.totalorder %s3172_s22, 0 }
  0x3d   : > { %2168 = vmatpush3.bf16.msra.mxu1 %v2432_v5  ;;  %v2445_v18 = vld [vmem:[#allocation2 + $0x28] sm:$0xff]   ;;  %v2446_v19 = vld [vmem:[#allocation2 + $0x70] sm:$0xff]   ;;  %v2449_v22 = vld [vmem:[#allocation2 + $0x78] sm:$0xff]   ;;  %s3086_s8 = scalar_lea.vmem [#allocation5], %s2353_s7  ;;  %s2355_s9 = smul.u32 1280, %s2665_s15 }
  0x3e   : > { %1991 = vmatpush3.bf16.msra.mxu0 %v2433_v6  ;;  %2169 = vmatprep.subr.bf16.mxu1 %v2678_v0  ;;  %v2447_v20 = vld [vmem:[#allocation2 + $0xb0] sm:$0xff]   ;;  %s2809_s30 = scalar_lea.vmem %s3164_s0, %s2354_s27  ;;  %v2450_v28 = vld [vmem:[#allocation2 + $0xb8] sm:$0xff]   ;;  %v2455_v38 = vld [vmem:[#allocation2 + $0x100] sm:$0xff]   ;;  %s1777_s10 = sshll.u32 %s3086_s8, 4  ;;  %s3112_s10 = int_to_ptr.vmem [resolvable:$true] %s1777_s10 }
  0x3f   : > { %1992 = vmatprep.subr.bf16.mxu0 %v2434_v7  ;;  %v2448_v21 = vld [vmem:[#allocation2 + $0x30] sm:$0xff]   ;;  %v2815_v26 = vld [vmem:[%s2809_s30 + $0x8] sm:$0xff]   ;;  %v2456_v39 = vld [vmem:[#allocation2 + $0xc0] sm:$0xff]   ;;  %s3110_s19 = scalar_lea.hbm %s3167_s3, %s2355_s9  ;;  %s2591_s15 = scalar_lea.vmem %s3112_s10, 1280 }
  0x40   : > { %v220_v23 = vld [vmem:[%s2809_s30] sm:$0xf]  ;;  %v221_v24 = vld [vmem:[%s2809_s30 + $0x4] sm:$0xf]  ;;  %v274_v32 = vshll.u32 %v2815_v26, 16  ;;  %v320_v33 = vrot.slane %v2815_v26, 1  ;;  %p2592_p8 = scmp.ne.s32.totalorder %s3112_s10, %s2591_s15 }
  0x41   : > { %2170 = vmatpush3.bf16.msra.mxu1 %v2435_v8  ;;  %v1880_v25 = vcombine.low %v220_v23, %v221_v24  ;;  %v231_v27 = vld [vmem:[%s2809_s30] sm:$0xe]  ;;  %v2451_v34 = vld [vmem:[#allocation2 + $0x38] sm:$0xff]   ;;  %v2459_v42 = vld [vmem:[#allocation2 + $0x140] sm:$0xff]   ;;  %v278_v43 = vshrl.u32 %v2815_v26, 16  ;;  %s2680_s23 = smov [#allocation5]  }
  0x42   : > { %1993 = vmatpush3.bf16.msra.mxu0 %v2436_v9  ;;  %2171 = vmatprep.subr.bf16.mxu1 %v2678_v0  ;;  %v1886_v29 = vcombine.low %v231_v27, %v221_v24  ;;  %v276_v37 = vrot.slane %v274_v32, 1  ;;  %v2825_v44 = vld [vmem:[%s2809_s30 + $0x10] sm:$0xff]   ;;  %v2457_v46 = vld [vmem:[#allocation2 + $0x108] sm:$0xff]   ;;  %v2461_v51 = vld [vmem:[#allocation2 + $0x110] sm:$0xff]   ;;  %p2593_p11 = pnand %p2592_p8, %p3179_p10  ;;  %s2595_s26 = sshll.u32 %s2680_s23, 4  ;;  %s2596_s26 = int_to_ptr.vmem [resolvable:$false] %s2595_s26 }
  0x43   : > { %1994 = vmatprep.subr.bf16.mxu0 %v2437_v10  ;;  %v267_v30 = vshrl.u32 %v1880_v25, 16  ;;  %v269_v31 = vshll.u32 %v1880_v25, 16  ;;  %v2458_v47 = vld [vmem:[#allocation2 + $0xc8] sm:$0xff]   ;;  %v282_v49 = vshll.u32 %v2825_v44, 16  ;;  %v322_v50 = vrot.slane %v2825_v44, 1  ;;  %v2462_v57 = vld [vmem:[#allocation2 + $0xd0] sm:$0xff]   ;;  %p2598_p1 = scmp.lt.s32.totalorder %s3112_s10, %s2596_s26 }
  0x44   : > { %v319_v35 = vrot.slane %v1886_v29, 1  ;;  %v280_v48 = vor.u32 %v278_v43, %v276_v37  ;;  %v2463_v53 = vld [vmem:[#allocation2 + $0x148] sm:$0xff]   ;;  %v286_v55 = vshrl.u32 %v2825_v44, 16  ;;  %v2465_v62 = vld [vmem:[#allocation2 + $0x118] sm:$0xff]   ;;  %v2467_v63 = vld [vmem:[#allocation2 + $0x150] sm:$0xff]   ;;  %p2594_p13 = pneg %p2593_p11  ;;  %s2597_s27 = scalar_lea.vmem %s2596_s26, 2560 }
  0x45   : > { %2172 = vmatpush3.bf16.msra.mxu1 %v2438_v11  ;;  %v271_v36 = vrot.slane %v269_v31, 1  ;;  %v284_v52 = vrot.slane %v282_v49, 1  ;;  %v2833_v54 = vld [vmem:[%s2809_s30 + $0x18] sm:$0xff]   ;;  %v323_v60 = vsel %vm318_vm2, %v320_v33, %v322_v50  ;;  %v2848_v4 = vld [vmem:[%s2809_s30 + $0x20] sm:$0xff]   ;;  %v2466_v5 = vld [vmem:[#allocation2 + $0xd8] sm:$0xff]   ;;  %p2599_p3 = scmp.lt.s32.totalorder %s2597_s27, %s2591_s15 }
  0x46   : > { %1995 = vmatpush3.bf16.msra.mxu0 %v2439_v12  ;;  %2173 = vmatprep.subr.bf16.mxu1 %v2678_v0  ;;  %v321_v41 = vsel %vm318_vm2, %v319_v35, %v320_v33  ;;  %v290_v59 = vshll.u32 %v2833_v54, 16  ;;  %v294_v1 = vshrl.u32 %v2833_v54, 16  ;;  %v324_v3 = vrot.slane %v2833_v54, 1  ;;  %v2468_v6 = vld [vmem:[#allocation2 + $0x120] sm:$0xff]   ;;  %v2469_v7 = vld [vmem:[#allocation2 + $0x158] sm:$0xff]  }
  0x47   : > { %1996 = vmatprep.subr.bf16.mxu0 %v2440_v13  ;;  %v272_v40 = vor.u32 %v271_v36, %v267_v30  ;;  %v285_v56 = vsel %vm265_vm1, %v280_v48, %v284_v52  ;;  %v288_v58 = vor.u32 %v286_v55, %v284_v52  ;;  %v298_v9 = vshll.u32 %v2848_v4, 16  ;;  %v2470_v10 = vld [vmem:[#allocation2 + $0xe0] sm:$0xff]   ;;  %v684_v27 = vld [vmem:[%s2809_s30 + $0x8] sm:$0xf]  ;;  %p2600_p5 = por %p2599_p3, %p2598_p1 }
  0x48   : > { %v292_v61 = vrot.slane %v290_v59, 1  ;;  %v325_v11 = vsel %vm318_vm2, %v322_v50, %v324_v3  ;;  %v2472_v13 = vld [vmem:[#allocation2 + $0x160] sm:$0xff]   ;;  %v2480_v35 = vld [vmem:[#allocation2 + $0x138] sm:$0xff]  }
  0x49   : > { %2174 = vmatpush3.bf16.msra.mxu1 %v2441_v14  ;;  %v277_v45 = vsel %vm265_vm1, %v272_v40, %v276_v37  ;;  %v300_v12 = vrot.slane %v298_v9, 1  ;;  %v2473_v14 = vld [vmem:[#allocation2 + $0x128] sm:$0xff]   ;;  %v2484_v31 = vld [vmem:[%s2809_s30 + $0xc] sm:$0xff]   ;;  %p2601_p6 = pnand %p2600_p5, %p2594_p13 }
  0x4a   : > { %1997 = vmatpush3.bf16.msra.mxu0 %v2442_v15  ;;  %2175 = vmatprep.subr.bf16.mxu1 %v2678_v0  ;;  %v293_v2 = vsel %vm265_vm1, %v288_v58, %v292_v61  ;;  %v296_v8 = vor.u32 %v294_v1, %v292_v61  ;;  %v2873_v32 = vld [vmem:[%s2809_s30 + $0x14] sm:$0xff]   ;;  %v735_v40 = vshll.u32 %v2484_v31, 16  ;;  %v2492_v58 = vld [vmem:[%s2809_s30 + $0x1c] sm:$0xff]  }
  0x4b   : > { %1998 = vmatprep.subr.bf16.mxu0 %v2443_v16  ;;  %559 = vmatprep.mubr.bf16.mxu0 %v277_v45  ;;  %v2855_v16 = vld [vmem:[%s2809_s30 + $0x28] ss:$0 sps:$4 sm:$0x11]   ;;  %v747_v61 = vshrl.u32 %v2873_v32, 16 }
  0x4c   : > { %v301_v15 = vsel %vm265_vm1, %v296_v8, %v300_v12  ;;  %v328_v30 = vrot.slane %v2855_v16, 1  ;;  %v737_v48 = vrot.slane %v735_v40, 1  ;;  %v2498_v40 = vld [vmem:[#allocation2 + $0x198] sm:$0xff]  }
  0x4d   : > { %2176 = vmatpush3.bf16.msra.mxu1 %v2444_v17  ;;  %v302_v17 = vshrl.u32 %v2848_v4, 16 }
  0x4e   : > { %1999 = vmatpush3.bf16.msra.mxu0 %v2445_v18  ;;  %2177 = vmatprep.subr.bf16.mxu1 %v2678_v0  ;;  %v326_v18 = vrot.slane %v2848_v4, 1 }
  0x4f   : > { %2000 = vmatprep.subr.bf16.mxu0 %v2446_v19  ;;  %v2474_v19 = vld [vmem:[#allocation2 + $0xe8] sm:$0xff]   ;;  %v304_v23 = vor.u32 %v302_v17, %v300_v12 }
  0x51   : > { %2178 = vmatpush3.bf16.msra.mxu1 %v2447_v20  ;;  %v2475_v20 = vld [vmem:[#allocation2 + $0x168] sm:$0xff]  }
  0x52   : > { %2001 = vmatpush3.bf16.msra.mxu0 %v2448_v21  ;;  %2179 = vmatprep.subr.bf16.mxu1 %v2678_v0  ;;  %v306_v21 = vshll.u32 %v2855_v16, 16 }
  0x53   : > { %2002 = vmatprep.subr.bf16.mxu0 %v2449_v22  ;;  %v2476_v22 = vld [vmem:[#allocation2 + $0x130] sm:$0xff]  }
  0x54   : > { %v308_v24 = vrot.slane %v306_v21, 1  ;;  %v2490_v21 = vld [vmem:[#allocation2 + $0x188] sm:$0xff]  }
  0x55   : > { %2180 = vmatpush3.bf16.msra.mxu1 %v2450_v28  ;;  %v327_v28 = vsel %vm318_vm2, %v324_v3, %v326_v18 }
  0x56   : > { %2003 = vmatpush3.bf16.msra.mxu0 %v2451_v34  ;;  %2201 = vmatprep.subr.bf16.mxu1 %v2678_v0  ;;  %v309_v33 = vsel %vm265_vm1, %v304_v23, %v308_v24  ;;  %v2479_v34 = vld [vmem:[#allocation2 + $0x170] sm:$0xff]   ;;  %v2495_v24 = vld [vmem:[#allocation2 + $0x208] sm:$0xff]  }
  0x57   : > { %2047 = vmatprep.subr.bf16.mxu0 %v2455_v38  ;;  %v695_v38 = vld [vmem:[%s2809_s30 + $0x4] sm:$0xc] }
  0x58   : > { %2182 = vmatmul.mubr.bf16.vlgmr.msra.gmra.mrb[0].mxu1 %v321_v41  ;;  %v739_v41 = vshrl.u32 %v2484_v31, 16  ;;  %v1918_v43 = vcombine.low %v695_v38, %v684_v27  ;;  %v2497_v38 = vld [vmem:[#allocation2 + $0x1d8] sm:$0xff]  }
  0x59   : > { %560 = vmatmul.mubr.bf16.vlgmr.msra.gmra.mrb[0].mxu0 %v1880_v25  ;;  %2185 = vmatprep.mubr.msk.bf16.mxu1 %vm2679_vm0, %v2678_v0  ;;  %v2478_v25 = vld [vmem:[#allocation2 + $0xf0] sm:$0xff]  }
  0x5a   : > { %2048 = vmatpush3.bf16.msra.mxu0 %v2456_v39  ;;  %2202 = vmatpush3.bf16.msra.mxu1 %v2459_v42  ;;  %v2481_v39 = vld [vmem:[#allocation2 + $0xf8] sm:$0xff]   ;;  %v743_v42 = vshll.u32 %v2873_v32, 16  ;;  %v777_v50 = vrot.slane %v1918_v43, 1  ;;  %v2500_v43 = vld [vmem:[#allocation2 + $0x1e0] sm:$0xff]  }
  0x5b   : > { %2049 = vmatprep.subr.bf16.mxu0 %v2457_v46  ;;  %2203 = vmatprep.subr.bf16.mxu1 %v2678_v0  ;;  %v778_v46 = vrot.slane %v2484_v31, 1 }
  0x5c   : > { %567 = vmatprep.mubr.bf16.mxu0 %v285_v56  ;;  %v745_v49 = vrot.slane %v743_v42, 1  ;;  %v329_v56 = vsel %vm318_vm2, %v326_v18, %v328_v30 }
  0x5e   : > { %2050 = vmatpush3.bf16.msra.mxu0 %v2458_v47  ;;  %2204 = vmatpush3.bf16.msra.mxu1 %v2463_v53  ;;  %v780_v47 = vrot.slane %v2873_v32, 1  ;;  %v741_v53 = vor.u32 %v739_v41, %v737_v48  ;;  %v749_v3 = vor.u32 %v747_v61, %v745_v49 }
  0x5f   : > { %2051 = vmatprep.subr.bf16.mxu0 %v2461_v51  ;;  %2205 = vmatprep.subr.bf16.mxu1 %v2678_v0  ;;  %v2487_v51 = vld [vmem:[#allocation2 + $0x1c0] sm:$0xff]  }
  0x60   : > { %2186 = vmatmul.mubr.bf16.gmra.mrb[4].mxu1 %v323_v60  ;;  %v2888_v55 = vsel %vm318_vm2, %v778_v46, %v780_v47  ;;  %v746_v59 = vsel %vm265_vm1, %v741_v53, %v745_v49  ;;  %v1179_v53 = vld [vmem:[%s2809_s30 + $0xc] sm:$0xf] }
  0x61   : > { %568 = vmatmul.mubr.bf16.gmra.mrb[4].mxu0 %v2815_v26  ;;  %2189 = vmatprep.mubr.msk.bf16.mxu1 %vm2679_vm0, %v2678_v0  ;;  %v683_v26 = vld [vmem:[%s2809_s30 + $0x4] sm:$0xe]  ;;  %v843_v1 = vrot.slane %v2888_v55, 1 }
  0x62   : > { %2052 = vmatpush3.bf16.msra.mxu0 %v2462_v57  ;;  %575 = vmatprep.mubr.bf16.mxu0 %v293_v2  ;;  %v2868_v29 = vcombine.low %v683_v26, %v684_v27  ;;  %v751_v2 = vshll.u32 %v2492_v58, 16  ;;  %v2915_v26 = vld [vmem:[%s2809_s30 + $0x2c] ss:$0 sps:$4 sm:$0x33]  }
  0x63   : > { %2053 = vmatprep.subr.bf16.mxu0 %v2465_v62  ;;  %2206 = vmatpush3.bf16.msra.mxu1 %v2467_v63  ;;  %v840_v62 = vrot.slane %v746_v59, 1  ;;  %v767_v31 = vshll.u32 %v2915_v26, 16  ;;  %v2955_v59 = vld [vmem:[%s2809_s30 + $0x18] sm:$0xff]  }
  0x64   : > { %2207 = vmatprep.subr.bf16.mxu1 %v2678_v0  ;;  %v728_v36 = vshrl.u32 %v2868_v29, 16  ;;  %v730_v37 = vshll.u32 %v2868_v29, 16  ;;  %v837_v8 = vrot.slane %v2868_v29, 1  ;;  %v2493_v29 = vld [vmem:[#allocation2 + $0x1d0] sm:$0xff]  }
  0x66   : > { %2054 = vmatpush3.bf16.msra.mxu0 %v2466_v5  ;;  %v732_v45 = vrot.slane %v730_v37, 1  ;;  %v838_v18 = vsel %vm318_vm2, %v837_v8, %v778_v46 }
  0x67   : > { %2055 = vmatprep.subr.bf16.mxu0 %v2468_v6  ;;  %2208 = vmatpush3.bf16.msra.mxu1 %v2469_v7  ;;  %v753_v6 = vrot.slane %v751_v2, 1  ;;  %v782_v7 = vrot.slane %v2492_v58, 1 }
  0x68   : > { %2190 = vmatmul.mubr.bf16.gmra.mrb[8].mxu1 %v325_v11  ;;  %2209 = vmatprep.subr.bf16.mxu1 %v2678_v0  ;;  %v733_v52 = vor.u32 %v732_v45, %v728_v36  ;;  %v755_v11 = vshrl.u32 %v2492_v58, 16  ;;  %v786_v45 = vrot.slane %v2915_v26, 1  ;;  %v2952_v58 = vld [vmem:[%s2809_s30 + $0x10] sm:$0xff]  }
  0x69   : > { %576 = vmatmul.mubr.bf16.gmra.mrb[8].mxu0 %v2825_v44  ;;  %2193 = vmatprep.mubr.msk.bf16.mxu1 %vm2679_vm0, %v2678_v0  ;;  %v2482_v44 = vld [vmem:[#allocation2 + $0x178] sm:$0xff]   ;;  %v754_v9 = vsel %vm265_vm1, %v749_v3, %v753_v6  ;;  %v1234_v2 = vshrl.u32 %v2952_v58, 16  ;;  %v1238_v3 = vshll.u32 %v2955_v59, 16 }
  0x6a   : > { %2056 = vmatpush3.bf16.msra.mxu0 %v2470_v10  ;;  %583 = vmatprep.mubr.bf16.mxu0 %v301_v15  ;;  %v738_v57 = vsel %vm265_vm1, %v733_v52, %v737_v48  ;;  %v2496_v10 = vld [vmem:[%s2809_s30 + $0x24] sm:$0xff]   ;;  %v845_v12 = vrot.slane %v754_v9, 1  ;;  %v2906_v15 = vsel %vm318_vm2, %v780_v47, %v782_v7  ;;  %v757_v16 = vor.u32 %v755_v11, %v753_v6  ;;  %v2502_v48 = vld [vmem:[#allocation2 + $0x1a0] sm:$0xff]  }
  0x6b   : > { %2210 = vmatpush3.bf16.msra.mxu1 %v2472_v13  ;;  %2057 = vmatprep.subr.bf16.mxu0 %v2473_v14  ;;  %v839_v60 = vrot.slane %v738_v57, 1  ;;  %v2488_v14 = vld [vmem:[#allocation2 + $0x180] sm:$0xff]   ;;  %v759_v17 = vshll.u32 %v2496_v10, 16  ;;  %v847_v23 = vrot.slane %v2906_v15, 1  ;;  %v2917_v27 = vrot.slane %v2496_v10, 1  ;;  %v2508_v6 = vld [vmem:[#allocation2 + $0x1f0] sm:$0xff]  }
  0x6c   : > { %2211 = vmatprep.subr.bf16.mxu1 %v2678_v0  ;;  %v771_v47 = vshrl.u32 %v2915_v26, 16  ;;  %v1178_v52 = vld [vmem:[%s2809_s30 + $0x8] sm:$0xc] }
  0x6d   : > { %v841_v5 = vsel %vm318_vm2, %v839_v60, %v840_v62  ;;  %v2924_v36 = vsel %vm318_vm2, %v782_v7, %v2917_v27  ;;  %v2506_v60 = vld [vmem:[#allocation2 + $0x1a8] sm:$0xff]  }
  0x6e   : > { %2058 = vmatpush3.bf16.msra.mxu0 %v2474_v19  ;;  %v2489_v19 = vld [vmem:[#allocation2 + $0x1c8] sm:$0xff]   ;;  %v851_v42 = vrot.slane %v2924_v36, 1 }
  0x6f   : > { %2212 = vmatpush3.bf16.msra.mxu1 %v2475_v20  ;;  %2059 = vmatprep.subr.bf16.mxu0 %v2476_v22  ;;  %v761_v20 = vrot.slane %v759_v17, 1  ;;  %v846_v22 = vsel %vm318_vm2, %v840_v62, %v845_v12 }
  0x70   : > { %2194 = vmatmul.mubr.bf16.gmra.mrb[12].mxu1 %v327_v28  ;;  %2213 = vmatprep.subr.bf16.mxu1 %v2678_v0  ;;  %v763_v28 = vshrl.u32 %v2496_v10, 16  ;;  %v852_v49 = vsel %vm318_vm2, %v847_v23, %v851_v42  ;;  %v1190_v10 = vld [vmem:[%s2809_s30 + $0x8] sm:$0x8] }
  0x71   : > { %584 = vmatmul.mubr.bf16.gmra.mrb[12].mxu0 %v2833_v54  ;;  %2197 = vmatprep.mubr.msk.bf16.mxu1 %vm2679_vm0, %v2678_v0  ;;  %v779_v54 = vsel %vm318_vm2, %v777_v50, %v778_v46  ;;  %v2504_v50 = vld [vmem:[#allocation2 + $0x220] sm:$0xff]   ;;  %v1950_v17 = vcombine.low %v1190_v10, %v1179_v53 }
  0x72   : > { %591 = vmatprep.mubr.bf16.mxu0 %v309_v33  ;;  %2060 = vmatpush3.bf16.msra.mxu0 %v2478_v25  ;;  %v842_v63 = vrot.slane %v779_v54, 1  ;;  %v762_v25 = vsel %vm265_vm1, %v757_v16, %v761_v20  ;;  %v765_v32 = vor.u32 %v763_v28, %v761_v20  ;;  %v848_v33 = vsel %vm318_vm2, %v843_v1, %v847_v23  ;;  %v2510_v16 = vld [vmem:[%s2809_s30 + $0x2c] ss:$0 sps:$4 sm:$0x11]  }
  0x73   : > { %2214 = vmatpush3.bf16.msra.mxu1 %v2479_v34  ;;  %2061 = vmatprep.subr.bf16.mxu0 %v2480_v35  ;;  %v849_v30 = vrot.slane %v762_v25, 1  ;;  %v769_v34 = vrot.slane %v767_v31, 1  ;;  %v2494_v35 = vld [vmem:[#allocation2 + $0x190] sm:$0xff]   ;;  %v2946_v54 = vsel %vm318_vm2, %v2917_v27, %v786_v45  ;;  %v2512_v20 = vld [vmem:[#allocation2 + $0x1f8] sm:$0xff]   ;;  %v1242_v23 = vshrl.u32 %v2955_v59, 16 }
  0x74   : > { %2215 = vmatprep.subr.bf16.mxu1 %v2678_v0  ;;  %v844_v13 = vsel %vm318_vm2, %v842_v63, %v843_v1  ;;  %v855_v63 = vrot.slane %v2946_v54, 1  ;;  %v1230_v1 = vshll.u32 %v2952_v58, 16  ;;  %v861_v25 = vrot.slane %v786_v45, 1 }
  0x75   : > { %v850_v37 = vsel %vm318_vm2, %v845_v12, %v849_v30  ;;  %v2929_v41 = vsel %vm265_vm1, %v765_v32, %v769_v34  ;;  %v773_v57 = vor.u32 %v771_v47, %v769_v34  ;;  %v1240_v12 = vrot.slane %v1238_v3, 1 }
  0x76   : > { %2062 = vmatpush3.bf16.msra.mxu0 %v2481_v39  ;;  %v2499_v39 = vld [vmem:[#allocation2 + $0x210] sm:$0xff]   ;;  %v853_v46 = vrot.slane %v2929_v41, 1  ;;  %v1232_v9 = vrot.slane %v1230_v1, 1  ;;  %v857_v28 = vrot.slane %v2510_v16, 1  ;;  %v1273_v31 = vrot.slane %v2952_v58, 1 }
  0x77   : > { %2216 = vmatpush3.bf16.msra.mxu1 %v2482_v44  ;;  %2106 = vmatprep.subr.bf16.mxu0 %v2487_v51  ;;  %v2501_v44 = vld [vmem:[#allocation2 + $0x218] sm:$0xff]   ;;  %v2505_v51 = vld [vmem:[#allocation2 + $0x1e8] sm:$0xff]   ;;  %v859_v8 = vrot.slane %v773_v57, 1  ;;  %v1275_v32 = vrot.slane %v2955_v59, 1  ;;  %v1244_v26 = vor.u32 %v1242_v23, %v1240_v12 }
  0x78   : > { %2198 = vmatmul.mubr.bf16.gmra.mrb[16].mxu1 %v329_v56  ;;  %2237 = vmatprep.subr.bf16.mxu1 %v2678_v0  ;;  %v854_v56 = vsel %vm318_vm2, %v849_v30, %v853_v46  ;;  %v1272_v30 = vrot.slane %v1950_v17, 1 }
  0x79   : > { %592 = vmatmul.mubr.bf16.gmra.mrb[16].mxu0 %v2848_v4  ;;  %2217 = vmatprep.mubr.msk.bf16.mxu1 %vm2679_vm0, %v2678_v0  ;;  %v2491_v4 = vld [vmem:[#allocation2 + $0x200] sm:$0xff]   ;;  %v1276_v41 = vsel %vm318_vm2, %v1273_v31, %v1275_v32 }
  0x7a   : > { %1054 = vmatprep.mubr.bf16.mxu0 %v841_v5  ;;  %v2507_v5 = vld [vmem:[#allocation2 + $0x228] sm:$0xff]  }
  0x80   : > { %2218 = vmatmul.mubr.bf16.vlgmr.msra.gmra.mrb[0].mxu1 %v844_v13  ;;  %v2970_v13 = vld [vmem:[%s2809_s30 + $0x20] sm:$0xff]  }
  0x81   : > { %1055 = vmatmul.mubr.bf16.vlgmr.msra.gmra.mrb[20].mxu0 %v838_v18  ;;  %2221 = vmatprep.mubr.msk.bf16.mxu1 %vm2679_vm0, %v2678_v0  ;;  %v860_v18 = vsel %vm318_vm2, %v853_v46, %v859_v8  ;;  %v1340_v46 = vrot.slane %v1276_v41, 2 }
  0x82   : > { %2107 = vmatpush3.bf16.msra.mxu0 %v2488_v14  ;;  %2238 = vmatpush3.bf16.msra.mxu1 %v2491_v4  ;;  %v856_v14 = vsel %vm318_vm2, %v851_v42, %v855_v63  ;;  %v1236_v4 = vor.u32 %v1234_v2, %v1232_v9 }
  0x83   : > { %2108 = vmatprep.subr.bf16.mxu0 %v2489_v19  ;;  %1062 = vmatprep.mubr.bf16.mxu0 %v846_v22  ;;  %v2511_v19 = vld [vmem:[#allocation2 + $0x230] sm:$0xff]  }
  0x84   : > { %2239 = vmatprep.subr.bf16.mxu1 %v2678_v0  ;;  %v1241_v22 = vsel %vm265_vm1, %v1236_v4, %v1240_v12 }
  0x86   : > { %2109 = vmatpush3.bf16.msra.mxu0 %v2490_v21  ;;  %2240 = vmatpush3.bf16.msra.mxu1 %v2495_v24  ;;  %v1246_v24 = vshll.u32 %v2970_v13, 16 }
  0x87   : > { %2110 = vmatprep.subr.bf16.mxu0 %v2493_v29  ;;  %2241 = vmatprep.subr.bf16.mxu1 %v2678_v0  ;;  %v2513_v29 = vld [vmem:[#allocation2 + $0x1b8] sm:$0xff]  }
  0x88   : > { %2222 = vmatmul.mubr.bf16.gmra.mrb[4].mxu1 %v848_v33  ;;  %v2514_v33 = vld [vmem:[#allocation2 + $0x238] sm:$0xff]  }
  0x89   : > { %1063 = vmatmul.mubr.bf16.gmra.mrb[24].mxu0 %v2888_v55  ;;  %2225 = vmatprep.mubr.msk.bf16.mxu1 %vm2679_vm0, %v2678_v0  ;;  %v2948_v55 = vcombine.low %v1178_v52, %v1179_v53  ;;  %v2521_v53 = vld [vmem:[%s2809_s30 + $0x30] ss:$0 sps:$4 sm:$0x77]  }
  0x8a   : > { %2111 = vmatpush3.bf16.msra.mxu0 %v2494_v35  ;;  %1070 = vmatprep.mubr.bf16.mxu0 %v850_v37  ;;  %v1337_v35 = vrot.slane %v1241_v22, 2  ;;  %v2989_v37 = vld [vmem:[%s2809_s30 + $0x28] sm:$0xff]   ;;  %v1281_v12 = vrot.slane %v2521_v53, 1  ;;  %v1266_v4 = vshrl.u32 %v2521_v53, 16 }
  0x8b   : > { %2112 = vmatprep.subr.bf16.mxu0 %v2497_v38  ;;  %2242 = vmatpush3.bf16.msra.mxu1 %v2499_v39  ;;  %v1223_v61 = vshrl.u32 %v2948_v55, 16  ;;  %v1225_v62 = vshll.u32 %v2948_v55, 16  ;;  %v862_v38 = vsel %vm318_vm2, %v855_v63, %v861_v25  ;;  %v858_v39 = vsel %vm318_vm2, %v2917_v27, %v857_v28 }
  0x8c   : > { %2243 = vmatprep.subr.bf16.mxu1 %v2678_v0  ;;  %v1254_v45 = vshll.u32 %v2989_v37, 16  ;;  %v1333_v47 = vrot.slane %v2948_v55, 2  ;;  %v1258_v55 = vshrl.u32 %v2989_v37, 16  ;;  %v1342_v63 = vrot.slane %v2955_v59, 2 }
  0x8d   : > { %v1227_v7 = vrot.slane %v1225_v62, 1  ;;  %v1279_v1 = vrot.slane %v2989_v37, 1  ;;  %v1364_v28 = vrot.slane %v1281_v12, 2 }
  0x8e   : > { %2113 = vmatpush3.bf16.msra.mxu0 %v2498_v40  ;;  %v1274_v40 = vsel %vm318_vm2, %v1272_v30, %v1273_v31  ;;  %v1256_v52 = vrot.slane %v1254_v45, 1 }
  0x8f   : > { %2114 = vmatprep.subr.bf16.mxu0 %v2500_v43  ;;  %2244 = vmatpush3.bf16.msra.mxu1 %v2501_v44  ;;  %v1228_v11 = vor.u32 %v1227_v7, %v1223_v61  ;;  %v1250_v44 = vshrl.u32 %v2970_v13, 16  ;;  %v1339_v27 = vrot.slane %v1274_v40, 2  ;;  %v1282_v17 = vsel %vm318_vm2, %v1279_v1, %v1281_v12 }
  0x90   : > { %2226 = vmatmul.mubr.bf16.gmra.mrb[8].mxu1 %v852_v49  ;;  %2245 = vmatprep.subr.bf16.mxu1 %v2678_v0  ;;  %v1277_v49 = vrot.slane %v2970_v13, 1  ;;  %v1260_v3 = vor.u32 %v1258_v55, %v1256_v52  ;;  %v1879_v55 = vld [vmem:[%s3166_s2] ss:$0 sm:$0xff] }
  0x91   : > { %1071 = vmatmul.mubr.bf16.gmra.mrb[28].mxu0 %v2906_v15  ;;  %2229 = vmatprep.mubr.msk.bf16.mxu1 %vm2679_vm0, %v2678_v0  ;;  %v2509_v15 = vld [vmem:[#allocation2 + $0x1b0] sm:$0xff]   ;;  %v1233_v21 = vsel %vm265_vm1, %v1228_v11, %v1232_v9  ;;  %v1341_v54 = vsel %vm1332_vm3, %v1339_v27, %v1340_v46  ;;  %v1348_v11 = vrot.slane %v2970_v13, 2  ;;  %v1354_v13 = vrot.slane %v2989_v37, 2 }
  0x92   : > { %2115 = vmatpush3.bf16.msra.mxu0 %v2502_v48  ;;  %1078 = vmatprep.mubr.bf16.mxu0 %v854_v56  ;;  %v1336_v34 = vrot.slane %v1233_v21, 2  ;;  %v1334_v48 = vrot.slane %v2952_v58, 2  ;;  %v1278_v57 = vsel %vm318_vm2, %v1275_v32, %v1277_v49  ;;  %v1262_v58 = vshll.u32 %v2521_v53, 16 }
  0x93   : > { %2246 = vmatpush3.bf16.msra.mxu1 %v2504_v50  ;;  %2116 = vmatprep.subr.bf16.mxu0 %v2505_v51  ;;  %v1346_v62 = vrot.slane %v1278_v57, 2  ;;  %v1280_v8 = vsel %vm318_vm2, %v1277_v49, %v1279_v1  ;;  %v1349_v16 = vsel %vm1332_vm3, %v1342_v63, %v1348_v11  ;;  %v1355_v23 = vsel %vm1332_vm3, %v1348_v11, %v1354_v13 }
  0x94   : > { %2247 = vmatprep.subr.bf16.mxu1 %v2678_v0  ;;  %v1338_v42 = vsel %vm1332_vm3, %v1336_v34, %v1337_v35  ;;  %v1335_v56 = vsel %vm1332_vm3, %v1333_v47, %v1334_v48  ;;  %v1343_v7 = vsel %vm1332_vm3, %v1334_v48, %v1342_v63  ;;  %v1352_v59 = vrot.slane %v1280_v8, 2 }
  0x96   : > { %2117 = vmatpush3.bf16.msra.mxu0 %v2506_v60 }
  0x97   : > { %2248 = vmatpush3.bf16.msra.mxu1 %v2507_v5  ;;  %2118 = vmatprep.subr.bf16.mxu0 %v2508_v6  ;;  %v1264_v5 = vrot.slane %v1262_v58, 1  ;;  %v1347_v6 = vsel %vm1332_vm3, %v1340_v46, %v1346_v62 }
  0x98   : > { %2230 = vmatmul.mubr.bf16.gmra.mrb[12].mxu1 %v856_v14  ;;  %2249 = vmatprep.subr.bf16.mxu1 %v2678_v0 }
  0x99   : > { %1079 = vmatmul.mubr.bf16.gmra.mrb[32].mxu0 %v2924_v36  ;;  %2233 = vmatprep.mubr.msk.bf16.mxu1 %vm2679_vm0, %v2678_v0  ;;  %v1248_v36 = vrot.slane %v1246_v24, 1  ;;  %v1265_v10 = vsel %vm265_vm1, %v1260_v3, %v1264_v5  ;;  %v2522_v24 = vld [vmem:[%s2809_s30 + $0x30] ss:$0 sps:$4 sm:$0x33]  }
  0x9a   : > { %1086 = vmatprep.mubr.bf16.mxu0 %v860_v18  ;;  %2119 = vmatpush3.bf16.msra.mxu0 %v2509_v15  ;;  %v1356_v14 = vrot.slane %v1265_v10, 2  ;;  %v1353_v15 = vsel %vm1332_vm3, %v1346_v62, %v1352_v59 }
  0x9b   : > { %2250 = vmatpush3.bf16.msra.mxu1 %v2511_v19  ;;  %2120 = vmatprep.subr.bf16.mxu0 %v2512_v20  ;;  %v1249_v43 = vsel %vm265_vm1, %v1244_v26, %v1248_v36  ;;  %v1252_v51 = vor.u32 %v1250_v44, %v1248_v36  ;;  %v1268_v19 = vor.u32 %v1266_v4, %v1264_v5  ;;  %v1358_v20 = vrot.slane %v1282_v17, 2 }
  0x9c   : > { %2251 = vmatprep.subr.bf16.mxu1 %v2678_v0  ;;  %v1344_v50 = vrot.slane %v1249_v43, 2 }
  0x9d   : > { %v1257_v61 = vsel %vm265_vm1, %v1252_v51, %v1256_v52  ;;  %v1362_v21 = vrot.slane %v1268_v19, 2  ;;  %v1359_v22 = vsel %vm1332_vm3, %v1352_v59, %v1358_v20  ;;  %v1365_v30 = vsel %vm1332_vm3, %v1358_v20, %v1364_v28 }
  0x9e   : > { %2121 = vmatpush3.bf16.msra.mxu0 %v2513_v29  ;;  %v1345_v60 = vsel %vm1332_vm3, %v1337_v35, %v1344_v50  ;;  %v1350_v2 = vrot.slane %v1257_v61, 2  ;;  %v1360_v29 = vrot.slane %v2522_v24, 2 }
  0x9f   : > { %2252 = vmatpush3.bf16.msra.mxu1 %v2514_v33  ;;  %v1363_v25 = vsel %vm1332_vm3, %v1356_v14, %v1362_v21 }
  0xa0   : > { %2234 = vmatmul.mubr.bf16.gmra.mrb[16].mxu1 %v862_v38  ;;  %v1351_v9 = vsel %vm1332_vm3, %v1344_v50, %v1350_v2  ;;  %v1357_v18 = vsel %vm1332_vm3, %v1350_v2, %v1356_v14  ;;  %v1361_v31 = vsel %vm1332_vm3, %v1354_v13, %v1360_v29 }
  0xa1   : > { %1087 = vmatmul.mubr.bf16.gmra.mrb[36].mxu0 %v858_v39  ;;  %2253 = vmatprep.mubr.msk.bf16.mxu1 %vm2679_vm0, %v2678_v0 }
  0xa2   : > { %1557 = vmatprep.mubr.bf16.mxu0 %v1338_v42 }
  0xa8   : > { %2254 = vmatmul.mubr.bf16.vlgmr.msra.gmra.mrb[0].mxu1 %v1341_v54 }
  0xa9   : > { %1558 = vmatmul.mubr.bf16.vlgmr.msra.gmra.mrb[40].mxu0 %v1335_v56  ;;  %2257 = vmatprep.mubr.msk.bf16.mxu1 %vm2679_vm0, %v2678_v0 }
  0xaa   : > { %1565 = vmatprep.mubr.bf16.mxu0 %v1345_v60 }
  0xb0   : > { %2258 = vmatmul.mubr.bf16.gmra.mrb[4].mxu1 %v1347_v6 }
  0xb1   : > { %1566 = vmatmul.mubr.bf16.gmra.mrb[44].mxu0 %v1343_v7  ;;  %2261 = vmatprep.mubr.msk.bf16.mxu1 %vm2679_vm0, %v2678_v0 }
  0xb2   : > { %1573 = vmatprep.mubr.bf16.mxu0 %v1351_v9 }
  0xb8   : > { %2262 = vmatmul.mubr.bf16.gmra.mrb[8].mxu1 %v1353_v15 }
  0xb9   : > { %1574 = vmatmul.mubr.bf16.gmra.mrb[48].mxu0 %v1349_v16  ;;  %2265 = vmatprep.mubr.msk.bf16.mxu1 %vm2679_vm0, %v2678_v0 }
  0xba   : > { %1581 = vmatprep.mubr.bf16.mxu0 %v1357_v18 }
  0xc0   : > { %2266 = vmatmul.mubr.bf16.gmra.mrb[12].mxu1 %v1359_v22 }
  0xc1   : > { %1582 = vmatmul.mubr.bf16.gmra.mrb[52].mxu0 %v1355_v23  ;;  %2269 = vmatprep.mubr.msk.bf16.mxu1 %vm2679_vm0, %v2678_v0 }
  0xc2   : > { %1589 = vmatprep.mubr.bf16.mxu0 %v1363_v25 }
  0xc8   : > { %2270 = vmatmul.mubr.bf16.gmra.mrb[16].mxu1 %v1365_v30 }
  0xc9   : > { %1590 = vmatmul.mubr.bf16.gmra.mrb[56].mxu0 %v1361_v31 }
 0x12c   : > { %v2004_v32 = vpop.f32.mrb[0].mxu0 }
 0x12d   : > { %v2005_v33 = vpop.f32.mrb[1].mxu0 }
 0x12e   : > { %v2006_v34 = vadd.f32 %v2005_v33, %v2004_v32  ;;  %v2007_v35 = vpop.f32.mrb[2].mxu0 }
 0x12f   : > { %v2008_v26 = vpop.f32.mrb[3].mxu0 }
 0x130   : > { %v2009_v36 = vadd.f32 %v2008_v26, %v2007_v35  ;;  %v2273_v63 = vadd.f32 %v2006_v34, %v1879_v55 }
 0x132   : > { %v2277_v5 = vadd.f32 %v2009_v36, %v1879_v55 }
 0x134   : > { %v2010_v37 = vpop.f32.mrb[4].mxu0 }
 0x135   : > { %v2011_v38 = vpop.f32.mrb[5].mxu0 }
 0x136   : > { %v2012_v39 = vadd.f32 %v2011_v38, %v2010_v37  ;;  %v2013_v40 = vpop.f32.mrb[6].mxu0 }
 0x137   : > { %v2014_v0 = vpop.f32.mrb[7].mxu0 }
 0x138   : > { %v2015_v41 = vadd.f32 %v2014_v0, %v2013_v40  ;;  %v2281_v59 = vadd.f32 %v2012_v39, %v1879_v55 }
 0x13a   : > { %v2285_v4 = vadd.f32 %v2015_v41, %v1879_v55 }
 0x13c   : > { %v2016_v42 = vpop.f32.mrb[8].mxu0 }
 0x13d   : > { %v2017_v43 = vpop.f32.mrb[9].mxu0 }
 0x13e   : > { %v2018_v44 = vadd.f32 %v2017_v43, %v2016_v42  ;;  %v2019_v45 = vpop.f32.mrb[10].mxu0 }
 0x13f   : > { %v2020_v27 = vpop.f32.mrb[11].mxu0 }
 0x140   : > { %v2021_v46 = vadd.f32 %v2020_v27, %v2019_v45  ;;  %v2289_v20 = vadd.f32 %v2018_v44, %v1879_v55 }
 0x142   : > { %v2293_v23 = vadd.f32 %v2021_v46, %v1879_v55 }
 0x144   : > { %v2022_v47 = vpop.f32.mrb[12].mxu0 }
 0x145   : > { %v2023_v48 = vpop.f32.mrb[13].mxu0 }
 0x146   : > { %v2024_v49 = vadd.f32 %v2023_v48, %v2022_v47  ;;  %v2025_v50 = vpop.f32.mrb[14].mxu0 }
 0x147   : > { %v2026_v51 = vpop.f32.mrb[15].mxu0 }
 0x148   : > { %v2027_v52 = vadd.f32 %v2026_v51, %v2025_v50  ;;  %v2297_v31 = vadd.f32 %v2024_v49, %v1879_v55 }
 0x14a   : > { %v2301_v35 = vadd.f32 %v2027_v52, %v1879_v55 }
 0x14c   : > { %v2028_v53 = vpop.f32.mrb[16].mxu0 }
 0x14d   : > { %v2029_v54 = vpop.f32.mrb[17].mxu0 }
 0x14e   : > { %v2030_v56 = vadd.f32 %v2029_v54, %v2028_v53  ;;  %v2031_v57 = vpop.f32.mrb[18].mxu0 }
 0x14f   : > { %v2032_v60 = vpop.f32.mrb[19].mxu0 }
 0x150   : > { %v2033_v61 = vadd.f32 %v2032_v60, %v2031_v57  ;;  %v2305_v40 = vadd.f32 %v2030_v56, %v1879_v55 }
 0x152   : > { %v2309_v43 = vadd.f32 %v2033_v61, %v1879_v55 }
 0x154   : > { %v2063_v58 = vpop.f32.mrb[20].mxu0 }
 0x155   : > { %v2064_v62 = vpop.f32.mrb[21].mxu0 }
 0x156   : > { %v2065_v1 = vadd.f32 %v2064_v62, %v2063_v58  ;;  %v2066_v2 = vpop.f32.mrb[22].mxu0 }
 0x157   : > { %v2067_v3 = vpop.f32.mrb[23].mxu0 }
 0x158   : > { %v2274_v6 = vadd.f32 %v2273_v63, %v2065_v1  ;;  %v2068_v7 = vadd.f32 %v2067_v3, %v2066_v2 }
 0x15a   : > { %v2278_v8 = vadd.f32 %v2277_v5, %v2068_v7 }
 0x15c   : > { %v2069_v9 = vpop.f32.mrb[24].mxu0 }
 0x15d   : > { %v2070_v10 = vpop.f32.mrb[25].mxu0 }
 0x15e   : > { %v2071_v11 = vadd.f32 %v2070_v10, %v2069_v9  ;;  %v2072_v12 = vpop.f32.mrb[26].mxu0 }
 0x15f   : > { %v2073_v14 = vpop.f32.mrb[27].mxu0 }
 0x160   : > { %v2282_v15 = vadd.f32 %v2281_v59, %v2071_v11  ;;  %v2074_v16 = vadd.f32 %v2073_v14, %v2072_v12 }
 0x162   : > { %v2286_v17 = vadd.f32 %v2285_v4, %v2074_v16 }
 0x164   : > { %v2075_v18 = vpop.f32.mrb[28].mxu0 }
 0x165   : > { %v2076_v19 = vpop.f32.mrb[29].mxu0 }
 0x166   : > { %v2077_v13 = vadd.f32 %v2076_v19, %v2075_v18  ;;  %v2078_v21 = vpop.f32.mrb[30].mxu0 }
 0x167   : > { %v2079_v22 = vpop.f32.mrb[31].mxu0 }
 0x168   : > { %v3042_v24 = vadd.f32 %v2289_v20, %v2077_v13  ;;  %v2080_v25 = vadd.f32 %v2079_v22, %v2078_v21 }
 0x16a   : > { %v3044_v28 = vadd.f32 %v2293_v23, %v2080_v25 }
 0x16c   : > { %v2081_v29 = vpop.f32.mrb[32].mxu0 }
 0x16d   : > { %v2082_v30 = vpop.f32.mrb[33].mxu0 }
 0x16e   : > { %v2083_v32 = vadd.f32 %v2082_v30, %v2081_v29  ;;  %v2084_v33 = vpop.f32.mrb[34].mxu0 }
 0x16f   : > { %v2085_v34 = vpop.f32.mrb[35].mxu0 }
 0x170   : > { %v3046_v26 = vadd.f32 %v2297_v31, %v2083_v32  ;;  %v2086_v36 = vadd.f32 %v2085_v34, %v2084_v33 }
 0x172   : > { %v3048_v37 = vadd.f32 %v2301_v35, %v2086_v36 }
 0x174   : > { %v2087_v38 = vpop.f32.mrb[36].mxu0 }
 0x175   : > { %v2088_v39 = vpop.f32.mrb[37].mxu0 }
 0x176   : > { %v2089_v0 = vadd.f32 %v2088_v39, %v2087_v38  ;;  %v2090_v41 = vpop.f32.mrb[38].mxu0 }
 0x177   : > { %v2091_v42 = vpop.f32.mrb[39].mxu0 }
 0x178   : > { %v3050_v44 = vadd.f32 %v2305_v40, %v2089_v0  ;;  %v2092_v45 = vadd.f32 %v2091_v42, %v2090_v41 }
 0x17a   : > { %v3052_v27 = vadd.f32 %v2309_v43, %v2092_v45 }
 0x17b   : > { %v1632_v46 = vpop.f32.mrb[0].mxu1 }
 0x17c   : > { %v2122_v47 = vpop.f32.mrb[40].mxu0  ;;  %v2255_v48 = vpop.f32.mrb[1].mxu1 }
 0x17d   : > { %v2123_v49 = vpop.f32.mrb[41].mxu0  ;;  %v1635_v50 = vpop.f32.mrb[2].mxu1 }
 0x17e   : > { %v2124_v51 = vadd.f32 %v2123_v49, %v2122_v47  ;;  %v2125_v52 = vpop.f32.mrb[42].mxu0  ;;  %v2256_v53 = vpop.f32.mrb[3].mxu1 }
 0x17f   : > { %v2126_v54 = vpop.f32.mrb[43].mxu0 }
 0x180   : > { %v2275_v57 = vadd.f32 %v2274_v6, %v2124_v51  ;;  %v2127_v56 = vadd.f32 %v2126_v54, %v2125_v52 }
 0x182   : > { %v3054_v60 = vadd.f32 %v2275_v57, %v1632_v46  ;;  %v2279_v58 = vadd.f32 %v2278_v8, %v2127_v56 }
 0x183   : > { %v1640_v61 = vpop.f32.mrb[4].mxu1 }
 0x184   : > { %v1975_v55 = vmul.f32 -1.442695, %v3054_v60  ;;  %v3057_v62 = vadd.f32 %v2279_v58, %v1635_v50  ;;  %v2128_v63 = vpop.f32.mrb[44].mxu0  ;;  %v2259_v1 = vpop.f32.mrb[5].mxu1 }
 0x185   : > { %v2129_v2 = vpop.f32.mrb[45].mxu0  ;;  %v1643_v3 = vpop.f32.mrb[6].mxu1 }
 0x186   : > { %2523 = vpow2.f32 %v1975_v55  ;;  %v1976_v5 = vmul.f32 -1.442695, %v3057_v62  ;;  %v2130_v7 = vadd.f32 %v2129_v2, %v2128_v63  ;;  %v2131_v9 = vpop.f32.mrb[46].mxu0  ;;  %v2260_v10 = vpop.f32.mrb[7].mxu1 }
 0x187   : > { %v2132_v6 = vpop.f32.mrb[47].mxu0 }
 0x188   : > { %2525 = vpow2.f32 %v1976_v5  ;;  %v2283_v59 = vadd.f32 %v2282_v15, %v2130_v7  ;;  %v2133_v11 = vadd.f32 %v2132_v6, %v2131_v9 }
 0x18a   : > { %v3060_v8 = vadd.f32 %v2283_v59, %v1640_v61  ;;  %v2287_v12 = vadd.f32 %v2286_v17, %v2133_v11 }
 0x18b   : > { %v1648_v14 = vpop.f32.mrb[8].mxu1 }
 0x18c   : > { %v1977_v4 = vmul.f32 -1.442695, %v3060_v8  ;;  %v3063_v16 = vadd.f32 %v2287_v12, %v1643_v3  ;;  %v2134_v18 = vpop.f32.mrb[48].mxu0  ;;  %v2263_v19 = vpop.f32.mrb[9].mxu1 }
 0x18d   : > { %v2135_v20 = vpop.f32.mrb[49].mxu0  ;;  %v1651_v13 = vpop.f32.mrb[10].mxu1 }
 0x18e   : > { %2527 = vpow2.f32 %v1977_v4  ;;  %v1978_v21 = vmul.f32 -1.442695, %v3063_v16  ;;  %v2136_v22 = vadd.f32 %v2135_v20, %v2134_v18  ;;  %v2137_v23 = vpop.f32.mrb[50].mxu0  ;;  %v2264_v25 = vpop.f32.mrb[11].mxu1 }
 0x18f   : > { %v2138_v15 = vpop.f32.mrb[51].mxu0 }
 0x190   : > { %v2524_v29 = vpop.eup %2523  ;;  %2529 = vpow2.f32 %v1978_v21  ;;  %v2291_v17 = vadd.f32 %v3042_v24, %v2136_v22  ;;  %v2139_v30 = vadd.f32 %v2138_v15, %v2137_v23 }
 0x191   : > { %v1711_v31 = vadd.f32 1.0, %v2524_v29 }
 0x192   : > { %v2526_v32 = vpop.eup %2525  ;;  %v3067_v33 = vadd.f32 %v2291_v17, %v1648_v14  ;;  %v2295_v34 = vadd.f32 %v3044_v28, %v2139_v30 }
 0x193   : > { %2531 = vrcp.f32 %v1711_v31  ;;  %v1712_v35 = vadd.f32 1.0, %v2526_v32  ;;  %v1656_v36 = vpop.f32.mrb[12].mxu1 }
 0x194   : > { %v1979_v38 = vmul.f32 -1.442695, %v3067_v33  ;;  %v3071_v39 = vadd.f32 %v2295_v34, %v1651_v13  ;;  %v2140_v40 = vpop.f32.mrb[52].mxu0  ;;  %v2267_v0 = vpop.f32.mrb[13].mxu1 }
 0x195   : > { %2533 = vrcp.f32 %v1712_v35  ;;  %v2141_v24 = vpop.f32.mrb[53].mxu0  ;;  %v1659_v41 = vpop.f32.mrb[14].mxu1 }
 0x196   : > { %2535 = vpow2.f32 %v1979_v38  ;;  %v1980_v42 = vmul.f32 -1.442695, %v3071_v39  ;;  %v2142_v43 = vadd.f32 %v2141_v24, %v2140_v40  ;;  %v2143_v45 = vpop.f32.mrb[54].mxu0  ;;  %v2268_v28 = vpop.f32.mrb[15].mxu1 }
 0x197   : > { %v2144_v46 = vpop.f32.mrb[55].mxu0 }
 0x198   : > { %v2528_v47 = vpop.eup %2527  ;;  %2537 = vpow2.f32 %v1980_v42  ;;  %v2299_v48 = vadd.f32 %v3046_v26, %v2142_v43  ;;  %v2145_v49 = vadd.f32 %v2144_v46, %v2143_v45 }
 0x199   : > { %v1713_v50 = vadd.f32 1.0, %v2528_v47 }
 0x19a   : > { %v2530_v51 = vpop.eup %2529  ;;  %v3078_v52 = vadd.f32 %v2299_v48, %v1656_v36  ;;  %v2303_v53 = vadd.f32 %v3048_v37, %v2145_v49 }
 0x19b   : > { %2539 = vrcp.f32 %v1713_v50  ;;  %v1714_v54 = vadd.f32 1.0, %v2530_v51  ;;  %v1664_v57 = vpop.f32.mrb[16].mxu1 }
 0x19c   : > { %v1981_v56 = vmul.f32 -1.442695, %v3078_v52  ;;  %v3082_v58 = vadd.f32 %v2303_v53, %v1659_v41  ;;  %v2146_v61 = vpop.f32.mrb[56].mxu0  ;;  %v2271_v55 = vpop.f32.mrb[17].mxu1 }
 0x19d   : > { %v2532_v63 = vpop.eup %2531  ;;  %2541 = vrcp.f32 %v1714_v54  ;;  %v2147_v26 = vpop.f32.mrb[57].mxu0 }
 0x19e   : > { %v1667_v1 = vpop.f32.mrb[18].mxu1  ;;  %v1741_v2 = vmul.f32 %v2532_v63, %v3054_v60  ;;  %2543 = vpow2.f32 %v1981_v56  ;;  %v1982_v3 = vmul.f32 -1.442695, %v3082_v58  ;;  %v2148_v5 = vadd.f32 %v2147_v26, %v2146_v61  ;;  %v2149_v37 = vpop.f32.mrb[58].mxu0 }
 0x19f   : > { %v2272_v7 = vpop.f32.mrb[19].mxu1  ;;  %v2534_v9 = vpop.eup %2533 }
 0x1a0   : > { %v2150_v10 = vpop.f32.mrb[59].mxu0  ;;  %v2536_v6 = vpop.eup %2535  ;;  %1751 = vst [vmem:[%s3086_s8] sm:$0xff] %v1741_v2  ;;  %v1742_v59 = vmul.f32 %v2534_v9, %v3057_v62  ;;  %2545 = vpow2.f32 %v1982_v3  ;;  %v2307_v11 = vadd.f32 %v3050_v44, %v2148_v5 }
 0x1a1   : > { %v2151_v60 = vadd.f32 %v2150_v10, %v2149_v37  ;;  %v1715_v12 = vadd.f32 1.0, %v2536_v6 }
 0x1a2   : > { %v2538_v14 = vpop.eup %2537  ;;  %1752 = vst [vmem:[%s3086_s8 + $0x8] sm:$0xff] %v1742_v59  ;;  %v2308_v4 = vadd.f32 %v2307_v11, %v1664_v57 }
 0x1a3   : > { %v2311_v18 = vadd.f32 %v3052_v27, %v2151_v60  ;;  %2547 = vrcp.f32 %v1715_v12  ;;  %v1716_v19 = vadd.f32 1.0, %v2538_v14 }
 0x1a4   : > { %v1983_v20 = vmul.f32 -1.442695, %v2308_v4 }
 0x1a5   : > { %v2312_v13 = vadd.f32 %v2311_v18, %v1667_v1  ;;  %v2540_v21 = vpop.eup %2539  ;;  %2549 = vrcp.f32 %v1716_v19 }
 0x1a6   : > { %v1743_v62 = vmul.f32 %v2540_v21, %v3060_v8  ;;  %2551 = vpow2.f32 %v1983_v20 }
 0x1a7   : > { %v1984_v22 = vmul.f32 -1.442695, %v2312_v13  ;;  %v2542_v44 = vpop.eup %2541 }
 0x1a8   : > { %v2544_v23 = vpop.eup %2543  ;;  %1753 = vst [vmem:[%s3086_s8 + $0x10] sm:$0xff] %v1743_v62  ;;  %v1744_v25 = vmul.f32 %v2542_v44, %v3063_v16 }
 0x1a9   : > { %2553 = vpow2.f32 %v1984_v22  ;;  %v1717_v27 = vadd.f32 1.0, %v2544_v23 }
 0x1aa   : > { %v2546_v15 = vpop.eup %2545  ;;  %1754 = vst [vmem:[%s3086_s8 + $0x18] sm:$0xff] %v1744_v25 }
 0x1ab   : > { %2555 = vrcp.f32 %v1717_v27  ;;  %v1718_v29 = vadd.f32 1.0, %v2546_v15 }
 0x1ad   : > { %v2548_v17 = vpop.eup %2547  ;;  %2557 = vrcp.f32 %v1718_v29 }
 0x1ae   : > { %v1745_v8 = vmul.f32 %v2548_v17, %v3067_v33 }
 0x1af   : > { %v2550_v30 = vpop.eup %2549 }
 0x1b0   : > { %v2552_v31 = vpop.eup %2551  ;;  %1755 = vst [vmem:[%s3086_s8 + $0x20] sm:$0xff] %v1745_v8  ;;  %v1746_v16 = vmul.f32 %v2550_v30, %v3071_v39 }
 0x1b1   : > { %v1719_v32 = vadd.f32 1.0, %v2552_v31 }
 0x1b2   : > { %1756 = vst [vmem:[%s3086_s8 + $0x28] sm:$0xff] %v1746_v16 }
 0x1b3   : > { %v2554_v34 = vpop.eup %2553  ;;  %2559 = vrcp.f32 %v1719_v32 }
 0x1b4   : > { %v1720_v35 = vadd.f32 1.0, %v2554_v34 }
 0x1b5   : > { %v2556_v36 = vpop.eup %2555 }
 0x1b6   : > { %2561 = vrcp.f32 %v1720_v35  ;;  %v1747_v33 = vmul.f32 %v2556_v36, %v3078_v52 }
 0x1b7   : > { %v2558_v38 = vpop.eup %2557 }
 0x1b8   : > { %1757 = vst [vmem:[%s3086_s8 + $0x30] sm:$0xff] %v1747_v33  ;;  %v1748_v40 = vmul.f32 %v2558_v38, %v3082_v58 }
 0x1ba   : > { %1758 = vst [vmem:[%s3086_s8 + $0x38] sm:$0xff] %v1748_v40 }
 0x1bd   : > { %v2560_v39 = vpop.eup %2559 }
 0x1be   : > { %v1749_v0 = vmul.f32 %v2560_v39, %v2308_v4 }
 0x1c0   : > { %v2562_v24 = vpop.eup %2561  ;;  %1759 = vst [vmem:[%s3086_s8 + $0x40] sm:$0xff] %v1749_v0 }
 0x1c1   : > { %v1750_v41 = vmul.f32 %v2562_v24, %v2312_v13 }
 0x1c3   : > { %1760 = vst [vmem:[%s3086_s8 + $0x48] sm:$0xff] %v1750_v41 }
 0x1c4   : > { %2604 = shalt.err (!%p2601_p6)
}
 0x1c5   : > { %s2605_s28 = scalar_lea.hbm %s3110_s19, 1280  ;;  %s2609_s4 = scalar_lea.hbm %s3167_s3, 2560 }
 0x1c6   : > { %p2606_p7 = scmp.ne.s32.totalorder %s3110_s19, %s2605_s28  ;;  %p2610_p0 = scmp.lt.u32.totalorder %s3110_s19, %s3167_s3 }
 0x1c7   : > { %p2611_p2 = scmp.lt.u32.totalorder %s2609_s4, %s2605_s28  ;;  %p2613_p8 = scmp.lt.u32.totalorder %s2605_s28, %s3110_s19 }
 0x1c8   : > { %p2607_p9 = pnand %p2606_p7, %p3179_p10 }
 0x1c9   : > { %p2612_p4 = por %p2611_p2, %p2610_p0 }
 0x1ca   : > { %p2608_p12 = pneg %p2607_p9 }
 0x1cb   : > { %p2614_p11 = por %p2613_p8, %p2612_p4 }
 0x1cd   : > { %p2615_p13 = pnand %p2614_p11, %p2608_p12 }
 0x1cf   : > { %2618 = shalt.err (!%p2615_p13)
}
 0x1d0   : > { %s2681_s7 = smov 128   ;;  %s2682_s8 = smov 8  }
 0x1d1   : > { %2360 = dma.vmem_to_hbm [thread:$0]  (%p3179_p10), %s3112_s10, 1280, %s3110_s19, %s3118_s21, %s2681_s7, %s2681_s7, %s2682_s8  }
 0x1d2 PF: > { %p2372_p1 = scmp.ge.s32.totalorder %s2673_s17, 2  ;;  %s1792_s9 = sand.u32 1, %s2653_s12  }
 0x1d3   : > { %p3180_p3 = scmp.ne.s32.totalorder %s3173_s24, 0  ;;  %s1793_s11 = scalar_lea.sflag [#allocation4], %s1792_s9 }
 0x1d5   : > { %p2367_p5 = pnand %p2372_p1, %p3180_p3 }
 0x1d7   : > { %2648 = dma.done.wait (!%p2367_p5), %s1793_s11, 1280  }
 0x1d8   : > { %2650 = vsyncadd (!%p2367_p5), %s1793_s11, 4294966016  ;;  %s17_s17 = sadd.s32 1, %s2673_s17   ;;  %s3181_s12 = smov %s2657_s13 }
 0x1d9   : > { %p14_p6 = scmp.ge.s32.totalorder %s17_s17, 4   ;;  %s3182_s13 = smov %s2661_s14 }
 0x1da   : > { %s3183_s14 = smov %s2756_s25  ;;  %s3184_s15 = smov %s2669_s16 }
 0x1db   : > { %s3185_s16 = smov %s3187_s20  ;;  %16 = sbr.rel (!%p14_p6) target bundleno = 5 (0x5), region = 74 }
 0x1e2   :  { %1798 = vsyncpa [#allocation3], 1 }
 0x1e3   :  { %1800 = vsyncpa [#allocation3 + $0x1], 1 }
 0x1e4   :  { %1801 = vsyncpa [#allocation4], 1 }
 0x1e5   :  { %1803 = vsyncpa [#allocation4 + $0x1], 1 }

</bundles_post_ra>
